<compile_context>
chip_gen: v6e
topology: v6e:2x2x1
jax: 0.10.0
libtpu: 0.0.40
codegen_flags: <defaults>
</compile_context>

<pallas_src>
import jax
import jax.numpy as jnp
from jax.experimental import pallas as pl
from jax.experimental.pallas import tpu as pltpu

# Small, TPU-friendly synthetic sizes (real model: dim=1536, vocab ~100k).
BATCH = 256    # example batch (texts replicated to fill two 128-row tiles)
SEQ   = 8      # tokens per text (pad / truncate)
VOCAB = 256    # synthetic vocabulary size
DIM   = 128    # embedding dimension
TB    = 128    # max batch tile per grid step (fills MXU M-dim)


def _embed_kernel(ids_ref, table_ref, out_ref):
    """One grid step: embed `tb` texts.

    ids_ref   : (tb, SEQ)    int32  VMEM
    table_ref : (VOCAB, DIM) bf16   VMEM (full table, constant index_map)
    out_ref   : (tb, DIM)    f32    VMEM
    """
    tb, seq = ids_ref.shape
    vocab, _ = table_ref.shape

    # counts[b, v] = #{t : ids[b, t] == v}, built token-by-token so only a
    # (tb, VOCAB) f32 accumulator (<= 32 vregs) is live -- never a 3-D one-hot.
    vocab_iota = jax.lax.broadcasted_iota(jnp.int32, (tb, vocab), 1)  # hoisted
    counts = jnp.zeros((tb, vocab), jnp.float32)
    for t in range(seq):                       # static unroll, seq == 8
        tok = ids_ref[:, t:t + 1]              # (tb, 1) int32, static lane slice
        counts = counts + (tok == vocab_iota).astype(jnp.float32)

    # Mean-pooled embedding = (counts @ table) / SEQ  -- bf16 MXU, f32 accum.
    # counts <= SEQ are exactly representable in bf16.
    pooled = jnp.dot(counts.astype(jnp.bfloat16), table_ref[...],
                     preferred_element_type=jnp.float32)          # (tb, DIM)
    out_ref[...] = pooled * jnp.float32(1.0 / seq)


def embedding_forward(token_ids: jax.Array, table_bf16: jax.Array) -> jax.Array:
    """token_ids: [B, SEQ] int32, table_bf16: [VOCAB, DIM] bf16 -> [B, DIM] f32."""
    B, S = token_ids.shape
    V, D = table_bf16.shape

    # Adaptive batch tile: multiple of 8 (sublane), capped at TB=128 (MXU M-dim).
    tb = min(TB, pl.cdiv(B, 8) * 8)

    # Pad batch to a multiple of the tile; padded rows are sliced off below.
    Bp = pl.cdiv(B, tb) * tb
    if Bp != B:
        token_ids = jnp.pad(token_ids, ((0, Bp - B), (0, 0)))

    grid = (Bp // tb,)
    out = pl.pallas_call(
        _embed_kernel,
        out_shape=jax.ShapeDtypeStruct((Bp, D), jnp.float32),
        grid_spec=pltpu.PrefetchScalarGridSpec(
            num_scalar_prefetch=0,
            grid=grid,
            in_specs=[
                pl.BlockSpec((tb, S), lambda i: (i, 0)),   # token-id tile
                pl.BlockSpec((V, D), lambda i: (0, 0)),    # full table, reused
            ],
            out_specs=pl.BlockSpec((tb, D), lambda i: (i, 0)),
        ),
        compiler_params=pltpu.CompilerParams(
            dimension_semantics=("parallel",)),   # batch tiles shard across TCs
    )(token_ids, table_bf16)
    return out[:B]


def _tokenize(texts, seq=SEQ, vocab=VOCAB):
    """Deterministic toy tokenizer: char codes mod vocab, pad with 0."""
    ids = []
    for t in texts:
        toks = [ord(c) % vocab for c in t][:seq]
        toks += [0] * (seq - len(toks))
        ids.append(toks)
    return jnp.asarray(ids, dtype=jnp.int32)


if __name__ == "__main__":
    key = jax.random.PRNGKey(0)
    k_table, _ = jax.random.split(key)

    # Deterministic synthetic embedding table ("model weights").
    table_f32 = jax.random.normal(k_table, (VOCAB, DIM), dtype=jnp.float32) * 0.02
    table_bf16 = table_f32.astype(jnp.bfloat16)   # one-time weight prep (bf16 MXU path)

    # A small TextTensor-like batch of strings, replicated to BATCH rows so
    # the grid has 2 parallel steps of TB=128.
    base_texts = [
        "hello world", "pallas tpu", "embedding", "kernel",
        "jax rocks", "mosaic", "text tensor", "vmem tile",
    ]
    texts = (base_texts * (BATCH // len(base_texts)))[:BATCH]
    token_ids = _tokenize(texts)                        # [256, 8] int32

    out = embedding_forward(token_ids, table_bf16)      # [256, 128] f32
    out = jax.block_until_ready(out)

    # Pure-JAX reference of the same synthetic model (same bf16 weights).
    # NOTE: padding token 0 is included in the mean, matching the toy spec.
    ref = jnp.mean(table_bf16.astype(jnp.float32)[token_ids], axis=1)
    assert out.shape == (BATCH, DIM) and out.dtype == jnp.float32
    assert jnp.allclose(out, ref, atol=1e-4, rtol=1e-4)

    # Also exercise the non-tile-aligned / small-batch path once.
    small = embedding_forward(token_ids[:13], table_bf16)
    small = jax.block_until_ready(small)
    assert small.shape == (13, DIM)
    assert jnp.allclose(small, ref[:13], atol=1e-4, rtol=1e-4)

    print("KERNEL_OK")
</pallas_src>

<mosaic_0001>
module attributes {stable_mosaic.version = 11 : i64} {
  func.func @_embed_kernel(%arg0: i32, %arg1: memref<128x8xi32, #tpu.memory_space<vmem>>, %arg2: memref<256x128xbf16, #tpu.memory_space<vmem>>, %arg3: memref<128x128xf32, #tpu.memory_space<vmem>>) attributes {dimension_semantics = [#tpu.dimension_semantics<parallel>], iteration_bounds = array<i64: 2>, scalar_prefetch = 0 : i64, scratch_operands = 0 : i64, tpu.core_type = #tpu.core_type<tc>, window_params = [{transform_indices = @transform_0, window_bounds = array<i64: 128, 8>}, {pipeline_mode = #tpu.pipeline_mode<synchronous>, transform_indices = @transform_1, window_bounds = array<i64: 256, 128>}, {transform_indices = @transform_2, window_bounds = array<i64: 128, 128>}]} {
    %0 = tpu.iota {dimensions = array<i32: 1>} : vector<128x256xi32>
    %cst = arith.constant 0.000000e+00 : f32
    %1 = vector.broadcast %cst : f32 to vector<128x256xf32>
    %c0 = arith.constant 0 : index
    %c0_0 = arith.constant 0 : index
    %2 = vector.load %arg1[%c0, %c0_0] : memref<128x8xi32, #tpu.memory_space<vmem>>, vector<128x1xi32>
    %3 = vector.broadcast %2 : vector<128x1xi32> to vector<128x256xi32>
    %4 = arith.cmpi eq, %3, %0 : vector<128x256xi32>
    %5 = arith.extui %4 : vector<128x256xi1> to vector<128x256xi32>
    %6 = arith.sitofp %5 : vector<128x256xi32> to vector<128x256xf32>
    %7 = arith.addf %1, %6 : vector<128x256xf32>
    %c0_1 = arith.constant 0 : index
    %c1 = arith.constant 1 : index
    %8 = vector.load %arg1[%c0_1, %c1] : memref<128x8xi32, #tpu.memory_space<vmem>>, vector<128x1xi32>
    %9 = vector.broadcast %8 : vector<128x1xi32> to vector<128x256xi32>
    %10 = arith.cmpi eq, %9, %0 : vector<128x256xi32>
    %11 = arith.extui %10 : vector<128x256xi1> to vector<128x256xi32>
    %12 = arith.sitofp %11 : vector<128x256xi32> to vector<128x256xf32>
    %13 = arith.addf %7, %12 : vector<128x256xf32>
    %c0_2 = arith.constant 0 : index
    %c2 = arith.constant 2 : index
    %14 = vector.load %arg1[%c0_2, %c2] : memref<128x8xi32, #tpu.memory_space<vmem>>, vector<128x1xi32>
    %15 = vector.broadcast %14 : vector<128x1xi32> to vector<128x256xi32>
    %16 = arith.cmpi eq, %15, %0 : vector<128x256xi32>
    %17 = arith.extui %16 : vector<128x256xi1> to vector<128x256xi32>
    %18 = arith.sitofp %17 : vector<128x256xi32> to vector<128x256xf32>
    %19 = arith.addf %13, %18 : vector<128x256xf32>
    %c0_3 = arith.constant 0 : index
    %c3 = arith.constant 3 : index
    %20 = vector.load %arg1[%c0_3, %c3] : memref<128x8xi32, #tpu.memory_space<vmem>>, vector<128x1xi32>
    %21 = vector.broadcast %20 : vector<128x1xi32> to vector<128x256xi32>
    %22 = arith.cmpi eq, %21, %0 : vector<128x256xi32>
    %23 = arith.extui %22 : vector<128x256xi1> to vector<128x256xi32>
    %24 = arith.sitofp %23 : vector<128x256xi32> to vector<128x256xf32>
    %25 = arith.addf %19, %24 : vector<128x256xf32>
    %c0_4 = arith.constant 0 : index
    %c4 = arith.constant 4 : index
    %26 = vector.load %arg1[%c0_4, %c4] : memref<128x8xi32, #tpu.memory_space<vmem>>, vector<128x1xi32>
    %27 = vector.broadcast %26 : vector<128x1xi32> to vector<128x256xi32>
    %28 = arith.cmpi eq, %27, %0 : vector<128x256xi32>
    %29 = arith.extui %28 : vector<128x256xi1> to vector<128x256xi32>
    %30 = arith.sitofp %29 : vector<128x256xi32> to vector<128x256xf32>
    %31 = arith.addf %25, %30 : vector<128x256xf32>
    %c0_5 = arith.constant 0 : index
    %c5 = arith.constant 5 : index
    %32 = vector.load %arg1[%c0_5, %c5] : memref<128x8xi32, #tpu.memory_space<vmem>>, vector<128x1xi32>
    %33 = vector.broadcast %32 : vector<128x1xi32> to vector<128x256xi32>
    %34 = arith.cmpi eq, %33, %0 : vector<128x256xi32>
    %35 = arith.extui %34 : vector<128x256xi1> to vector<128x256xi32>
    %36 = arith.sitofp %35 : vector<128x256xi32> to vector<128x256xf32>
    %37 = arith.addf %31, %36 : vector<128x256xf32>
    %c0_6 = arith.constant 0 : index
    %c6 = arith.constant 6 : index
    %38 = vector.load %arg1[%c0_6, %c6] : memref<128x8xi32, #tpu.memory_space<vmem>>, vector<128x1xi32>
    %39 = vector.broadcast %38 : vector<128x1xi32> to vector<128x256xi32>
    %40 = arith.cmpi eq, %39, %0 : vector<128x256xi32>
    %41 = arith.extui %40 : vector<128x256xi1> to vector<128x256xi32>
    %42 = arith.sitofp %41 : vector<128x256xi32> to vector<128x256xf32>
    %43 = arith.addf %37, %42 : vector<128x256xf32>
    %c0_7 = arith.constant 0 : index
    %c7 = arith.constant 7 : index
    %44 = vector.load %arg1[%c0_7, %c7] : memref<128x8xi32, #tpu.memory_space<vmem>>, vector<128x1xi32>
    %45 = vector.broadcast %44 : vector<128x1xi32> to vector<128x256xi32>
    %46 = arith.cmpi eq, %45, %0 : vector<128x256xi32>
    %47 = arith.extui %46 : vector<128x256xi1> to vector<128x256xi32>
    %48 = arith.sitofp %47 : vector<128x256xi32> to vector<128x256xf32>
    %49 = arith.addf %43, %48 : vector<128x256xf32>
    %50 = arith.truncf %49 : vector<128x256xf32> to vector<128x256xbf16>
    %c0_8 = arith.constant 0 : index
    %c0_9 = arith.constant 0 : index
    %51 = vector.load %arg2[%c0_8, %c0_9] : memref<256x128xbf16, #tpu.memory_space<vmem>>, vector<256x128xbf16>
    %cst_10 = arith.constant dense<0.000000e+00> : vector<128x128xf32>
    %52 = tpu.matmul %50, %51, %cst_10 {dimension_numbers = #tpu.dot_dimension_numbers<[1], [0], [0], [1], [0, 0, 1, 1], [], []>} : vector<128x256xbf16>, vector<256x128xbf16>, vector<128x128xf32> -> vector<128x128xf32>
    %cst_11 = arith.constant 1.250000e-01 : f32
    %53 = vector.broadcast %cst_11 : f32 to vector<128x128xf32>
    %54 = arith.mulf %52, %53 : vector<128x128xf32>
    %c0_12 = arith.constant 0 : index
    %c0_13 = arith.constant 0 : index
    %55 = vector.load %arg3[%c0_12, %c0_13] : memref<128x128xf32, #tpu.memory_space<vmem>>, vector<128x128xf32>
    tpu.vector_store %arg3[%c0_12, %c0_13], %54 {strides = array<i32>} : memref<128x128xf32, #tpu.memory_space<vmem>>, vector<128x128xf32>,
    return
  }
  func.func @transform_0(%arg0: i32) -> (i32, i32) {
    %c0_i32 = arith.constant 0 : i32
    %c0_i32_0 = arith.constant 0 : i32
    return %arg0, %c0_i32 : i32, i32
  }
  func.func @transform_1(%arg0: i32) -> (i32, i32) {
    %c0_i32 = arith.constant 0 : i32
    %c0_i32_0 = arith.constant 0 : i32
    %c0_i32_1 = arith.constant 0 : i32
    return %c0_i32, %c0_i32_0 : i32, i32
  }
  func.func @transform_2(%arg0: i32) -> (i32, i32) {
    %c0_i32 = arith.constant 0 : i32
    %c0_i32_0 = arith.constant 0 : i32
    return %arg0, %c0_i32 : i32, i32
  }
}

</mosaic_0001>

<bundles_post_ra>
// kernel: tpu_custom_call.1
= control target key start
LH: loop header
LB: loop body
LE: loop exit
PB: predicated region body
PF: predicated region fallthrough
CT: control target
= control target key end

     0   :  { %7 = vsyncpa [#allocation3], 0  ;;  %s4076_s0 = inlined_call_operand.vmem [shape: s32[256,8], index: 0, kind: input, shape index: {}]   ;;  %s4077_s1 = inlined_call_operand.vmem [shape: bf16[256,128], index: 1, kind: input, shape index: {}]   ;;  %s4078_s2 = inlined_call_operand.hbm [shape: f32[256,128], index: 2, kind: output, shape index: {}]  }
   0x1   :  { %9 = vsyncpa [#allocation3 + $0x1], 0  ;;  %s2478_s9 = smov 0   ;;  %s2480_s10 = smov 0  }
   0x2   :  { %s2482_s11 = smov 0   ;;  %s2484_s12 = smov 0  }
   0x3 LB: > { %s2499_s13 = sadd.s32 4294967295, %s2449_s12   ;;  %s1922_s14 = sadd.s32 4294967294, %s2449_s12   ;;  %s2449_s12 = sphi %s2484_s12, %s4133_s12   ;;  %s2445_s11 = sphi %s2482_s11, %s4132_s11   ;;  %s2441_s10 = sphi %s2480_s10, %s4131_s10   ;;  %s2437_s9 = sphi %s2478_s9, %s4130_s9  }
   0x4   : > { %s2503_s15 = sadd.s32 1, %s2449_s12   ;;  %s69_s16 = sadd.s32 1, %s2445_s11 }
   0x5   : > { %s66_s17 = ssub.s32 %s2449_s12, %s2503_s15  ;;  %p79_p0 = scmp.ne.s32.totalorder %s2445_s11, %s2441_s10 }
   0x6   : > { %p67_p1 = scmp.eq.s32.totalorder %s66_s17, 0  ;;  %p80_p2 = scmp.eq.s32.totalorder %s2499_s13, 1 }
   0x7   : > { %p85_p3 = scmp.ne.s32.totalorder %s2441_s10, %s2437_s9  ;;  %p86_p4 = scmp.eq.s32.totalorder %s1922_s14, 1 }
   0x8   : > { %s2514_s18 = scalar_select %p67_p1, %s2445_s11, %s69_s16  }
   0x9   : > { %p2516_p5 = por %p80_p2, %p79_p0  ;;  %p2520_p6 = por %p86_p4, %p85_p3 }
   0xa   : > { %p1925_p7 = scmp.ge.s32.totalorder %s2449_s12, 1  ;;  %p116_p8 = scmp.lt.s32.totalorder %s2449_s12, 3 }
   0xc   : > { %p117_p9 = pnand %p1925_p7, %p116_p8 }
   0xe   : > { %120 = sbr.rel (%p117_p9) target bundleno = 692 (0x2b4), region = 28 }
  0x13   : > { %s1927_s21 = sshll.u32 %s2499_s13, 4  ;;  %v2451_v0 = vmov 0   ;;  %v2452_v17 = vmov 1   ;;  %v2453_v18 = vmov 2   ;;  %v4079_v19 = vmov 3   ;;  %v2369_v36 = vld [vmem:[%s4077_s1 + $0x78] sm:$0xff]  }
  0x14   : > { %2338 = vset.pattern.permute.xlu1 %v2451_v0  ;;  %2337 = vset.pattern.permute.xlu0 %v2451_v0  ;;  %p139_p10 = scmp.lt.s32.totalorder %s1927_s21, 31  ;;  %v4084_v20 = vmov 4   ;;  %v4086_v22 = vmov 7   ;;  %v4082_v26 = vmov 5   ;;  %v4080_v31 = vmov 6   ;;  %v2370_v37 = vld [vmem:[%s4077_s1 + $0x38] sm:$0xff]  }
  0x15   : > { %2271 = vmatprep.subr.bf16.mxu1 %v2369_v36  ;;  %2207 = vmatprep.subr.bf16.mxu0 %v2369_v36  ;;  %v2371_v40 = vld [vmem:[%s4077_s1 + $0x70] sm:$0xff]   ;;  %v2373_v44 = vld [vmem:[%s4077_s1 + $0x68] sm:$0xff]   ;;  %v2375_v48 = vld [vmem:[%s4077_s1 + $0x60] sm:$0xff]   ;;  %s2206_s23 = sshll.u32 %s2499_s13, 11  ;;  %s2460_s30 = smov [#allocation2]  }
  0x16   : > { %s4135_s21 = smov (!%p139_p10, %s1927_s21), 31  ;;  %2279 = vmatpush3.bf16.msra.mxu1 %v2370_v37  ;;  %2208 = vmatpush3.bf16.msra.mxu0 %v2370_v37  ;;  %v2372_v41 = vld [vmem:[%s4077_s1 + $0x30] sm:$0xff]   ;;  %v2374_v45 = vld [vmem:[%s4077_s1 + $0x28] sm:$0xff]   ;;  %v2376_v49 = vld [vmem:[%s4077_s1 + $0x20] sm:$0xff]   ;;  %s4029_s28 = scalar_lea.hbm %s4078_s2, %s2206_s23 }
  0x17   : > { %s1928_s22 = sshll.u32 %s4135_s21, 3  ;;  %2272 = vmatprep.subr.bf16.mxu1 %v2371_v40  ;;  %2209 = vmatprep.subr.bf16.mxu0 %v2371_v40  ;;  %v2377_v52 = vld [vmem:[%s4077_s1 + $0x58] sm:$0xff]   ;;  %v2379_v56 = vld [vmem:[%s4077_s1 + $0x50] sm:$0xff]   ;;  %v2381_v60 = vld [vmem:[%s4077_s1 + $0x48] sm:$0xff]   ;;  %v146_v40 = vlaneseq  ;;  %s2393_s3 = sshll.u32 %s2460_s30, 4  ;;  %s2394_s3 = int_to_ptr.vmem [resolvable:$false] %s2393_s3 }
  0x18   : > { %s2530_s25 = scalar_lea.vmem %s4076_s0, %s1928_s22  ;;  %v2378_v53 = vld [vmem:[%s4077_s1 + $0x18] sm:$0xff]   ;;  %v2380_v57 = vld [vmem:[%s4077_s1 + $0x10] sm:$0xff]   ;;  %v2382_v61 = vld [vmem:[%s4077_s1 + $0x8] sm:$0xff]   ;;  %s2395_s4 = scalar_lea.vmem %s2394_s3, 4096 }
  0x19   : > { %v2533_v1 = vld [vmem:[%s2530_s25 + $0x10] sm:$0xff]  ;;  %v2536_v2 = vld [vmem:[%s2530_s25] sm:$0xff]  ;;  %v2541_v3 = vld [vmem:[%s2530_s25 + $0x18] sm:$0xff] }
  0x1a   : > { %172 = vperm.xlu1 %2338, %v2533_v1   ;;  %166 = vperm.xlu0 %2337, %v2536_v2   ;;  %v2544_v4 = vld [vmem:[%s2530_s25 + $0x8] sm:$0xff]  ;;  %v2552_v6 = vld [vmem:[%s2530_s25 + $0x20] sm:$0xff]  ;;  %v2555_v7 = vld [vmem:[%s2530_s25 + $0x38] sm:$0xff] }
  0x1b   : > { %v2547_v5 = vld [vmem:[%s2530_s25 + $0x28] sm:$0xff]  ;;  %v2560_v8 = vld [vmem:[%s2530_s25 + $0x30] sm:$0xff]  ;;  %v2568_v10 = vld [vmem:[%s2530_s25 + $0x40] sm:$0xff]  ;;  %2280 = vmatpush3.bf16.msra.mxu1 %v2372_v41  ;;  %2210 = vmatpush3.bf16.msra.mxu0 %v2372_v41 }
  0x1c   : > { %v2565_v9 = vld [vmem:[%s2530_s25 + $0x48] sm:$0xff]  ;;  %v2573_v11 = vld [vmem:[%s2530_s25 + $0x58] sm:$0xff]  ;;  %v2576_v12 = vld [vmem:[%s2530_s25 + $0x50] sm:$0xff]  ;;  %2273 = vmatprep.subr.bf16.mxu1 %v2373_v44  ;;  %2211 = vmatprep.subr.bf16.mxu0 %v2373_v44 }
  0x1d   : > { %v2581_v13 = vld [vmem:[%s2530_s25 + $0x68] sm:$0xff]  ;;  %v2584_v14 = vld [vmem:[%s2530_s25 + $0x60] sm:$0xff]  ;;  %v2589_v15 = vld [vmem:[%s2530_s25 + $0x78] sm:$0xff] }
  0x1e   : > { %175 = vperm.xlu1 %2338, %v2541_v3   ;;  %169 = vperm.xlu0 %2337, %v2544_v4   ;;  %v2592_v16 = vld [vmem:[%s2530_s25 + $0x70] sm:$0xff]  ;;  %v2383_v0 = vld [vmem:[%s4077_s1 + $0x40] sm:$0xff]  }
  0x1f   : > { %2281 = vmatpush3.bf16.msra.mxu1 %v2374_v45  ;;  %2212 = vmatpush3.bf16.msra.mxu0 %v2374_v45  ;;  %v2797_v45 = vand.u32 127, %v146_v40 }
  0x20   : > { %2274 = vmatprep.subr.bf16.mxu1 %v2375_v48  ;;  %2213 = vmatprep.subr.bf16.mxu0 %v2375_v48 }
  0x22   : > { %181 = vperm.xlu1 %2338, %v2547_v5   ;;  %178 = vperm.xlu0 %2337, %v2552_v6  }
  0x23   : > { %2282 = vmatpush3.bf16.msra.mxu1 %v2376_v49  ;;  %2214 = vmatpush3.bf16.msra.mxu0 %v2376_v49 }
  0x24   : > { %2275 = vmatprep.subr.bf16.mxu1 %v2377_v52  ;;  %2215 = vmatprep.subr.bf16.mxu0 %v2377_v52  ;;  %v2808_v52 = vadd.s32 128, %v2797_v45 }
  0x26   : > { %187 = vperm.xlu1 %2338, %v2555_v7   ;;  %184 = vperm.xlu0 %2337, %v2560_v8  }
  0x27   : > { %2283 = vmatpush3.bf16.msra.mxu1 %v2378_v53  ;;  %2216 = vmatpush3.bf16.msra.mxu0 %v2378_v53 }
  0x28   : > { %2276 = vmatprep.subr.bf16.mxu1 %v2379_v56  ;;  %2217 = vmatprep.subr.bf16.mxu0 %v2379_v56 }
  0x2a   : > { %193 = vperm.xlu1 %2338, %v2565_v9   ;;  %190 = vperm.xlu0 %2337, %v2568_v10  }
  0x2b   : > { %2284 = vmatpush3.bf16.msra.mxu1 %v2380_v57  ;;  %2218 = vmatpush3.bf16.msra.mxu0 %v2380_v57 }
  0x2c   : > { %2277 = vmatprep.subr.bf16.mxu1 %v2381_v60  ;;  %2219 = vmatprep.subr.bf16.mxu0 %v2381_v60 }
  0x2e   : > { %199 = vperm.xlu1 %2338, %v2573_v11   ;;  %196 = vperm.xlu0 %2337, %v2576_v12  }
  0x2f   : > { %2285 = vmatpush3.bf16.msra.mxu1 %v2382_v61  ;;  %2220 = vmatpush3.bf16.msra.mxu0 %v2382_v61 }
  0x30   : > { %2278 = vmatprep.subr.bf16.mxu1 %v2383_v0  ;;  %2221 = vmatprep.subr.bf16.mxu0 %v2383_v0 }
  0x32   : > { %205 = vperm.xlu1 %2338, %v2581_v13   ;;  %202 = vperm.xlu0 %2337, %v2584_v14  }
  0x36   : > { %211 = vperm.xlu1 %2338, %v2589_v15   ;;  %208 = vperm.xlu0 %2337, %v2592_v16  }
  0x3a   : > { %2340 = vset.pattern.permute.xlu1 %v2452_v17  ;;  %2339 = vset.pattern.permute.xlu0 %v2452_v17 }
  0x3b   : > { %345 = vperm.xlu1 %2340, %v2544_v4   ;;  %342 = vperm.xlu0 %2339, %v2536_v2  }
  0x3f   : > { %348 = vperm.xlu1 %2340, %v2533_v1   ;;  %351 = vperm.xlu0 %2339, %v2541_v3  }
  0x43   : > { %354 = vperm.xlu1 %2340, %v2552_v6   ;;  %357 = vperm.xlu0 %2339, %v2547_v5  }
  0x47   : > { %360 = vperm.xlu1 %2340, %v2560_v8   ;;  %363 = vperm.xlu0 %2339, %v2555_v7  }
  0x4b   : > { %366 = vperm.xlu1 %2340, %v2568_v10   ;;  %369 = vperm.xlu0 %2339, %v2565_v9  }
  0x4f   : > { %372 = vperm.xlu1 %2340, %v2576_v12   ;;  %375 = vperm.xlu0 %2339, %v2573_v11  }
  0x53   : > { %378 = vperm.xlu1 %2340, %v2584_v14   ;;  %381 = vperm.xlu0 %2339, %v2581_v13  }
  0x57   : > { %384 = vperm.xlu1 %2340, %v2592_v16   ;;  %387 = vperm.xlu0 %2339, %v2589_v15  }
  0x5b   : > { %2341 = vset.pattern.permute.xlu1 %v2453_v18  ;;  %2342 = vset.pattern.permute.xlu0 %v2453_v18 }
  0x5c   : > { %518 = vperm.xlu1 %2341, %v2536_v2   ;;  %521 = vperm.xlu0 %2342, %v2544_v4  }
  0x60   : > { %524 = vperm.xlu1 %2341, %v2533_v1   ;;  %530 = vperm.xlu0 %2342, %v2552_v6  }
  0x64   : > { %527 = vperm.xlu1 %2341, %v2541_v3   ;;  %536 = vperm.xlu0 %2342, %v2560_v8  }
  0x68   : > { %533 = vperm.xlu1 %2341, %v2547_v5   ;;  %542 = vperm.xlu0 %2342, %v2568_v10  }
  0x6c   : > { %539 = vperm.xlu1 %2341, %v2555_v7   ;;  %548 = vperm.xlu0 %2342, %v2576_v12  }
  0x70   : > { %545 = vperm.xlu1 %2341, %v2565_v9   ;;  %554 = vperm.xlu0 %2342, %v2584_v14  }
  0x74   : > { %551 = vperm.xlu1 %2341, %v2573_v11   ;;  %560 = vperm.xlu0 %2342, %v2592_v16  }
  0x78   : > { %557 = vperm.xlu1 %2341, %v2581_v13   ;;  %2343 = vset.pattern.permute.xlu0 %v4079_v19 }
  0x79   : > { %694 = vperm.xlu0 %2343, %v2536_v2  }
  0x7c   : > { %563 = vperm.xlu1 %2341, %v2589_v15  }
  0x7d   : > { %703 = vperm.xlu0 %2343, %v2541_v3  }
  0x80   : > { %2344 = vset.pattern.permute.xlu1 %v4079_v19 }
  0x81   : > { %697 = vperm.xlu1 %2344, %v2544_v4   ;;  %721 = vperm.xlu0 %2343, %v2565_v9  }
  0x85   : > { %700 = vperm.xlu1 %2344, %v2533_v1   ;;  %724 = vperm.xlu0 %2343, %v2576_v12  }
  0x89   : > { %718 = vperm.xlu1 %2344, %v2568_v10   ;;  %709 = vperm.xlu0 %2343, %v2547_v5  }
  0x8d   : > { %2345 = vset.pattern.permute.xlu1 %v4084_v20  ;;  %712 = vperm.xlu0 %2343, %v2560_v8  }
  0x8e   : > { %870 = vperm.xlu1 %2345, %v2536_v2  }
  0x91   : > { %739 = vperm.xlu0 %2343, %v2589_v15  }
  0x92   : > { %894 = vperm.xlu1 %2345, %v2568_v10  }
  0x95   : > { %v2643_v21 = vpop.permute.xlu1 %172  ;;  %2359 = vset.pattern.permute.xlu0 %v4086_v22  ;;  %v2646_v23 = vpop.permute.xlu0 %166 }
  0x96   : > { %897 = vperm.xlu1 %2345, %v2565_v9   ;;  %1401 = vperm.xlu0 %2359, %v2544_v4   ;;  %vm213_vm4 = vcmp.eq.s32.totalorder %v2646_v23, %v2797_v45  ;;  %vm214_vm5 = vcmp.eq.s32.totalorder %v2646_v23, %v2808_v52 }
  0x99   : > { %v2650_v24 = vpop.permute.xlu1 %175  ;;  %v2652_v25 = vpop.permute.xlu0 %169 }
  0x9a   : > { %2346 = vset.pattern.permute.xlu1 %v4082_v26  ;;  %1404 = vperm.xlu0 %2359, %v2533_v1  }
  0x9b   : > { %1049 = vperm.xlu1 %2346, %v2544_v4  }
  0x9d   : > { %v2657_v27 = vpop.permute.xlu1 %181  ;;  %v2659_v28 = vpop.permute.xlu0 %178 }
  0x9e   : > { %1431 = vperm.xlu0 %2359, %v2573_v11  }
  0x9f   : > { %1070 = vperm.xlu1 %2346, %v2568_v10  }
  0xa1   : > { %v2663_v29 = vpop.permute.xlu1 %187  ;;  %v2665_v30 = vpop.permute.xlu0 %184 }
  0xa2   : > { %4097 = vst [vmem:[#allocation5_spill] sm:$0xff] %v2663_v29  ;;  %1413 = vperm.xlu0 %2359, %v2547_v5  }
  0xa3   : > { %2347 = vset.pattern.permute.xlu1 %v4080_v31 }
  0xa4   : > { %1222 = vperm.xlu1 %2347, %v2536_v2  }
  0xa5   : > { %v2670_v32 = vpop.permute.xlu1 %193  ;;  %v2672_v33 = vpop.permute.xlu0 %190 }
  0xa6   : > { %2361 = vset.pattern.permute.xlu0 %v4084_v20  ;;  %vm229_vm0 = vcmp.eq.s32.totalorder %v2672_v33, %v2797_v45  ;;  %vm230_vm1 = vcmp.eq.s32.totalorder %v2672_v33, %v2808_v52 }
  0xa7   : > { %873 = vperm.xlu0 %2361, %v2544_v4  }
  0xa8   : > { %1246 = vperm.xlu1 %2347, %v2568_v10  }
  0xa9   : > { %v2677_v34 = vpop.permute.xlu1 %199  ;;  %v2679_v35 = vpop.permute.xlu0 %196 }
  0xaa   : > { %vm233_vm6 = vcmp.eq.s32.totalorder %v2679_v35, %v2797_v45  ;;  %vm234_vm7 = vcmp.eq.s32.totalorder %v2679_v35, %v2808_v52 }
  0xab   : > { %876 = vperm.xlu0 %2361, %v2533_v1  }
  0xac   : > { %1249 = vperm.xlu1 %2347, %v2565_v9  }
  0xad   : > { %v2689_v38 = vpop.permute.xlu1 %205  ;;  %v2691_v39 = vpop.permute.xlu0 %202 }
  0xae   : > { %4098 = vst [vmem:[#allocation6_spill] sm:$0xff] %v2689_v38  ;;  %vm237_vm8 = vcmp.eq.s32.totalorder %v2691_v39, %v2797_v45  ;;  %vm238_vm9 = vcmp.eq.s32.totalorder %v2691_v39, %v2808_v52 }
  0xaf   : > { %903 = vperm.xlu0 %2361, %v2573_v11  }
  0xb0   : > { %2348 = vset.pattern.permute.xlu1 %v4079_v19 }
  0xb1   : > { %v2701_v42 = vpop.permute.xlu1 %211  ;;  %727 = vperm.xlu1 %2348, %v2573_v11   ;;  %v2704_v43 = vpop.permute.xlu0 %208 }
  0xb3   : > { %885 = vperm.xlu0 %2361, %v2547_v5  }
  0xb5   : > { %2349 = vset.pattern.permute.xlu1 %v4086_v22 }
  0xb6   : > { %v2714_v46 = vpop.permute.xlu1 %345  ;;  %1398 = vperm.xlu1 %2349, %v2536_v2   ;;  %v2717_v47 = vpop.permute.xlu0 %342 }
  0xb7   : > { %888 = vperm.xlu0 %2361, %v2560_v8  }
  0xba   : > { %v2726_v50 = vpop.permute.xlu1 %348  ;;  %1422 = vperm.xlu1 %2349, %v2568_v10   ;;  %v2729_v51 = vpop.permute.xlu0 %351 }
  0xbb   : > { %915 = vperm.xlu0 %2361, %v2589_v15  }
  0xbe   : > { %v2738_v54 = vpop.permute.xlu1 %354  ;;  %1425 = vperm.xlu1 %2349, %v2565_v9   ;;  %v2741_v55 = vpop.permute.xlu0 %357 }
  0xbf   : > { %2363 = vset.pattern.permute.xlu0 %v4082_v26 }
  0xc0   : > { %1046 = vperm.xlu0 %2363, %v2536_v2   ;;  %v2384_v2 = vld [vmem:[%s4077_s1] sm:$0xff]  }
  0xc1   : > { %2286 = vmatpush3.bf16.msra.mxu1 %v2384_v2  ;;  %2222 = vmatpush3.bf16.msra.mxu0 %v2384_v2 }
  0xc2   : > { %v2751_v58 = vpop.permute.xlu1 %360  ;;  %2350 = vset.pattern.permute.xlu1 %v4084_v20  ;;  %v2754_v59 = vpop.permute.xlu0 %363 }
  0xc3   : > { %4099 = vst [vmem:[#allocation7_spill] sm:$0xff] %v2754_v59  ;;  %879 = vperm.xlu1 %2350, %v2541_v3  }
  0xc4   : > { %1073 = vperm.xlu0 %2363, %v2565_v9  }
  0xc6   : > { %v367_v62 = vpop.permute.xlu1 %366  ;;  %v2764_v63 = vpop.permute.xlu0 %369 }
  0xc7   : > { %900 = vperm.xlu1 %2350, %v2576_v12   ;;  %vm405_vm2 = vcmp.eq.s32.totalorder %v367_v62, %v2797_v45  ;;  %vm406_vm3 = vcmp.eq.s32.totalorder %v367_v62, %v2808_v52 }
  0xc8   : > { %1055 = vperm.xlu0 %2363, %v2541_v3  }
  0xca   : > { %v2774_v9 = vpop.permute.xlu1 %372  ;;  %v2776_v10 = vpop.permute.xlu0 %375 }
  0xcb   : > { %2351 = vset.pattern.permute.xlu1 %v4082_v26  ;;  %vm409_vm10 = vcmp.eq.s32.totalorder %v2774_v9, %v2797_v45  ;;  %vm410_vm11 = vcmp.eq.s32.totalorder %v2774_v9, %v2808_v52 }
  0xcc   : > { %1052 = vperm.xlu1 %2351, %v2533_v1   ;;  %1058 = vperm.xlu0 %2363, %v2552_v6  }
  0xce   : > { %v2781_v17 = vpop.permute.xlu1 %378  ;;  %v2783_v18 = vpop.permute.xlu0 %381 }
  0xcf   : > { %vm413_vm14 = vcmp.eq.s32.totalorder %v2781_v17, %v2797_v45  ;;  %vm414_vm15 = vcmp.eq.s32.totalorder %v2781_v17, %v2808_v52 }
  0xd0   : > { %1076 = vperm.xlu1 %2351, %v2576_v12   ;;  %1085 = vperm.xlu0 %2363, %v2581_v13  }
  0xd2   : > { %v2787_v36 = vpop.permute.xlu1 %384  ;;  %v2789_v37 = vpop.permute.xlu0 %387 }
  0xd4   : > { %1079 = vperm.xlu1 %2351, %v2573_v11   ;;  %1067 = vperm.xlu0 %2363, %v2555_v7  }
  0xd7   : > { %v2793_v41 = vpop.permute.xlu1 %518  ;;  %v2795_v44 = vpop.permute.xlu0 %521 }
  0xd8   : > { %2352 = vset.pattern.permute.xlu1 %v4080_v31  ;;  %2365 = vset.pattern.permute.xlu0 %v4080_v31 }
  0xd9   : > { %1231 = vperm.xlu1 %2352, %v2541_v3   ;;  %1225 = vperm.xlu0 %2365, %v2544_v4  }
  0xdb   : > { %v2803_v48 = vpop.permute.xlu1 %524  ;;  %v2805_v49 = vpop.permute.xlu0 %530 }
  0xdc   : > { %4100 = vst [vmem:[#allocation8_spill] sm:$0xff] %v2805_v49 }
  0xdd   : > { %1252 = vperm.xlu1 %2352, %v2576_v12   ;;  %1228 = vperm.xlu0 %2365, %v2533_v1   ;;  %v2459_v1 = vmov 0.0  }
  0xde   : > { %v1945_v33 = vsel %vm229_vm0, 1.0, %v2459_v1  ;;  %v1946_v23 = vsel %vm230_vm1, 1.0, %v2459_v1  ;;  %v1977_v56 = vsel %vm405_vm2, 1.0, %v2459_v1  ;;  %v1978_v57 = vsel %vm406_vm3, 1.0, %v2459_v1 }
  0xdf   : > { %v2822_v4 = vpop.permute.xlu1 %527  ;;  %v2824_v53 = vpop.permute.xlu0 %536  ;;  %v2840_v60 = vsel %vm213_vm4, 1.0, %v2459_v1  ;;  %v2843_v35 = vsel %vm214_vm5, 1.0, %v2459_v1  ;;  %v1949_v39 = vsel %vm233_vm6, 1.0, %v2459_v1  ;;  %v1950_v61 = vsel %vm234_vm7, 1.0, %v2459_v1 }
  0xe0   : > { %v1953_v62 = vsel %vm237_vm8, 1.0, %v2459_v1  ;;  %v1954_v0 = vsel %vm238_vm9, 1.0, %v2459_v1  ;;  %v502_v31 = vadd.f32 %v1978_v57, %v1946_v23  ;;  %v1982_v9 = vsel %vm410_vm11, 1.0, %v2459_v1 }
  0xe1   : > { %2353 = vset.pattern.permute.xlu1 %v4079_v19  ;;  %1255 = vperm.xlu0 %2365, %v2573_v11   ;;  %v501_v19 = vadd.f32 %v1977_v56, %v1945_v33  ;;  %v1981_v11 = vsel %vm409_vm10, 1.0, %v2459_v1  ;;  %vm241_vm0 = vcmp.eq.s32.totalorder %v2704_v43, %v2797_v45  ;;  %vm242_vm1 = vcmp.eq.s32.totalorder %v2704_v43, %v2808_v52 }
  0xe2   : > { %706 = vperm.xlu1 %2353, %v2552_v6   ;;  %vm389_vm2 = vcmp.eq.s32.totalorder %v2717_v47, %v2797_v45  ;;  %vm390_vm3 = vcmp.eq.s32.totalorder %v2717_v47, %v2808_v52  ;;  %v1985_v56 = vsel %vm413_vm14, 1.0, %v2459_v1  ;;  %v1986_v57 = vsel %vm414_vm15, 1.0, %v2459_v1 }
  0xe3   : > { %v2855_v2 = vpop.permute.xlu1 %533  ;;  %v543_v40 = vpop.permute.xlu0 %542  ;;  %vm417_vm6 = vcmp.eq.s32.totalorder %v2787_v36, %v2797_v45  ;;  %vm418_vm7 = vcmp.eq.s32.totalorder %v2787_v36, %v2808_v52  ;;  %v1957_v17 = vsel %vm241_vm0, 1.0, %v2459_v1  ;;  %vm219_vm10 = vcmp.eq.s32.totalorder %v2650_v24, %v2797_v45 }
  0xe4   : > { %vm581_vm12 = vcmp.eq.s32.totalorder %v543_v40, %v2797_v45  ;;  %vm582_vm13 = vcmp.eq.s32.totalorder %v543_v40, %v2808_v52  ;;  %v1989_v43 = vsel %vm417_vm6, 1.0, %v2459_v1  ;;  %v1990_v47 = vsel %vm418_vm7, 1.0, %v2459_v1 }
  0xe5   : > { %v2009_v26 = vsel %vm581_vm12, 1.0, %v2459_v1  ;;  %v2010_v20 = vsel %vm582_vm13, 1.0, %v2459_v1  ;;  %1237 = vperm.xlu0 %2365, %v2547_v5   ;;  %vm220_vm11 = vcmp.eq.s32.totalorder %v2650_v24, %v2808_v52  ;;  %vm565_vm12 = vcmp.eq.s32.totalorder %v2793_v41, %v2797_v45 }
  0xe6   : > { %v2867_v33 = vadd.f32 %v2009_v26, %v501_v19  ;;  %v2869_v23 = vadd.f32 %v2010_v20, %v502_v31  ;;  %730 = vperm.xlu1 %2353, %v2584_v14   ;;  %v505_v26 = vadd.f32 %v1981_v11, %v1949_v39  ;;  %v506_v31 = vadd.f32 %v1982_v9, %v1950_v61 }
  0xe7   : > { %v2881_v19 = vpop.permute.xlu1 %539  ;;  %v549_v20 = vpop.permute.xlu0 %548  ;;  %v1958_v11 = vsel %vm242_vm1, 1.0, %v2459_v1  ;;  %v1961_v9 = vsel %vm389_vm2, 1.0, %v2459_v1  ;;  %vm566_vm13 = vcmp.eq.s32.totalorder %v2793_v41, %v2808_v52  ;;  %vm395_vm0 = vcmp.eq.s32.totalorder %v2729_v51, %v2797_v45 }
  0xe8   : > { %4101 = vst [vmem:[#allocation9_spill] sm:$0xff] %v2881_v19  ;;  %vm585_vm4 = vcmp.eq.s32.totalorder %v549_v20, %v2797_v45  ;;  %vm586_vm5 = vcmp.eq.s32.totalorder %v549_v20, %v2808_v52  ;;  %vm396_vm1 = vcmp.eq.s32.totalorder %v2729_v51, %v2808_v52  ;;  %vm571_vm2 = vcmp.eq.s32.totalorder %v2822_v4, %v2797_v45 }
  0xe9   : > { %v2013_v40 = vsel %vm585_vm4, 1.0, %v2459_v1  ;;  %v2014_v22 = vsel %vm586_vm5, 1.0, %v2459_v1  ;;  %1240 = vperm.xlu0 %2365, %v2560_v8   ;;  %v1962_v8 = vsel %vm390_vm3, 1.0, %v2459_v1  ;;  %vm572_vm3 = vcmp.eq.s32.totalorder %v2822_v4, %v2808_v52 }
  0xea   : > { %v2899_v39 = vadd.f32 %v2013_v40, %v505_v26  ;;  %v2901_v61 = vadd.f32 %v2014_v22, %v506_v31  ;;  %733 = vperm.xlu1 %2353, %v2581_v13   ;;  %v509_v26 = vadd.f32 %v1985_v56, %v1953_v62  ;;  %v510_v31 = vadd.f32 %v1986_v57, %v1954_v0 }
  0xeb   : > { %v2921_v22 = vpop.permute.xlu1 %545  ;;  %v555_v20 = vpop.permute.xlu0 %554  ;;  %v485_v56 = vadd.f32 %v1961_v9, %v2840_v60  ;;  %v486_v36 = vadd.f32 %v1962_v8, %v2843_v35  ;;  %v4104_v57 = vmov 7   ;;  %v1993_v60 = vsel %vm565_vm12, 1.0, %v2459_v1 }
  0xec   : > { %vm589_vm8 = vcmp.eq.s32.totalorder %v555_v20, %v2797_v45  ;;  %vm590_vm9 = vcmp.eq.s32.totalorder %v555_v20, %v2808_v52  ;;  %v1994_v35 = vsel %vm566_vm13, 1.0, %v2459_v1  ;;  %v1936_v9 = vsel %vm220_vm11, 1.0, %v2459_v1 }
  0xed   : > { %v2017_v40 = vsel %vm589_vm8, 1.0, %v2459_v1  ;;  %v2018_v19 = vsel %vm590_vm9, 1.0, %v2459_v1  ;;  %1267 = vperm.xlu0 %2365, %v2589_v15   ;;  %v1967_v8 = vsel %vm395_vm0, 1.0, %v2459_v1  ;;  %vm399_vm6 = vcmp.eq.s32.totalorder %v2741_v55, %v2797_v45 }
  0xee   : > { %v2939_v62 = vadd.f32 %v2017_v40, %v509_v26  ;;  %v2941_v0 = vadd.f32 %v2018_v19, %v510_v31  ;;  %2354 = vset.pattern.permute.xlu1 %v4104_v57  ;;  %v513_v40 = vadd.f32 %v1989_v43, %v1957_v17  ;;  %v514_v19 = vadd.f32 %v1990_v47, %v1958_v11 }
  0xef   : > { %v2951_v20 = vpop.permute.xlu1 %551  ;;  %v561_v26 = vpop.permute.xlu0 %560  ;;  %1407 = vperm.xlu1 %2354, %v2541_v3   ;;  %v1935_v11 = vsel %vm219_vm10, 1.0, %v2459_v1  ;;  %v1968_v31 = vsel %vm396_vm1, 1.0, %v2459_v1  ;;  %v661_v43 = vadd.f32 %v1993_v60, %v485_v56  ;;  %v662_v47 = vadd.f32 %v1994_v35, %v486_v36 }
  0xf0   : > { %4102 = vst [vmem:[#allocation10_spill] sm:$0xff] %v2939_v62  ;;  %4103 = vst [vmem:[#allocation11_spill] sm:$0xff] %v2941_v0  ;;  %vm593_vm14 = vcmp.eq.s32.totalorder %v561_v26, %v2797_v45  ;;  %vm594_vm15 = vcmp.eq.s32.totalorder %v561_v26, %v2808_v52  ;;  %v1999_v26 = vsel %vm571_vm2, 1.0, %v2459_v1  ;;  %vm400_vm7 = vcmp.eq.s32.totalorder %v2741_v55, %v2808_v52 }
  0xf1   : > { %v2021_v15 = vsel %vm593_vm14, 1.0, %v2459_v1  ;;  %v2022_v41 = vsel %vm594_vm15, 1.0, %v2459_v1  ;;  %2368 = vset.pattern.permute.xlu0 %v4104_v57  ;;  %v4108_v36 = vmov 4   ;;  %vm223_vm10 = vcmp.eq.s32.totalorder %v2657_v27, %v2797_v45 }
  0xf2   : > { %v2964_v17 = vadd.f32 %v2021_v15, %v513_v40  ;;  %v2966_v3 = vadd.f32 %v2022_v41, %v514_v19  ;;  %1419 = vperm.xlu0 %2368, %v2555_v7   ;;  %v2000_v40 = vsel %vm572_vm3, 1.0, %v2459_v1  ;;  %v491_v15 = vadd.f32 %v1967_v8, %v1935_v11 }
  0xf3   : > { %v2973_v51 = vpop.permute.xlu1 %557  ;;  %1428 = vperm.xlu1 %2354, %v2576_v12   ;;  %v492_v41 = vadd.f32 %v1968_v31, %v1936_v9  ;;  %vm224_vm11 = vcmp.eq.s32.totalorder %v2657_v27, %v2808_v52  ;;  %vm225_vm12 = vcmp.eq.s32.totalorder %v2665_v30, %v2797_v45  ;;  %vm226_vm13 = vcmp.eq.s32.totalorder %v2665_v30, %v2808_v52 }
  0xf4   : > { %4105 = vst [vmem:[#allocation12_spill] sm:$0xff] %v2964_v17  ;;  %4106 = vst [vmem:[#allocation13_spill] sm:$0xff] %v2966_v3  ;;  %v695_v4 = vpop.permute.xlu0 %694  ;;  %v667_v35 = vadd.f32 %v1999_v26, %v491_v15  ;;  %v1972_v27 = vsel %vm400_vm7, 1.0, %v2459_v1  ;;  %v1939_v30 = vsel %vm223_vm10, 1.0, %v2459_v1  ;;  %vm401_vm14 = vcmp.eq.s32.totalorder %v2751_v58, %v2797_v45 }
  0xf5   : > { %4107 = vst [vmem:[#allocation14_spill] sm:$0xff] %v2973_v51  ;;  %vm741_vm4 = vcmp.eq.s32.totalorder %v695_v4, %v2797_v45  ;;  %vm742_vm5 = vcmp.eq.s32.totalorder %v695_v4, %v2808_v52  ;;  %v668_v4 = vadd.f32 %v2000_v40, %v492_v41  ;;  %v1940_v40 = vsel %vm224_vm11, 1.0, %v2459_v1 }
  0xf6   : > { %v2025_v24 = vsel %vm741_vm4, 1.0, %v2459_v1  ;;  %v2026_v19 = vsel %vm742_vm5, 1.0, %v2459_v1  ;;  %vm402_vm15 = vcmp.eq.s32.totalorder %v2751_v58, %v2808_v52  ;;  %v1942_v55 = vsel %vm226_vm13, 1.0, %v2459_v1 }
  0xf7   : > { %v2993_v3 = vadd.f32 %v2025_v24, %v661_v43  ;;  %v2995_v12 = vadd.f32 %v2026_v19, %v662_v47  ;;  %v2997_v56 = vpop.permute.xlu1 %563  ;;  %2355 = vset.pattern.permute.xlu1 %v4108_v36  ;;  %v1971_v43 = vsel %vm399_vm6, 1.0, %v2459_v1  ;;  %v1941_v24 = vsel %vm225_vm12, 1.0, %v2459_v1 }
  0xf8   : > { %v704_v60 = vpop.permute.xlu0 %703  ;;  %882 = vperm.xlu1 %2355, %v2552_v6   ;;  %vm243_vm0 = vcmp.eq.s32.totalorder %v2701_v42, %v2797_v45  ;;  %vm244_vm1 = vcmp.eq.s32.totalorder %v2701_v42, %v2808_v52  ;;  %v495_v19 = vadd.f32 %v1971_v43, %v1939_v30  ;;  %v496_v15 = vadd.f32 %v1972_v27, %v1940_v40 }
  0xf9   : > { %vm747_vm8 = vcmp.eq.s32.totalorder %v704_v60, %v2797_v45  ;;  %vm748_vm9 = vcmp.eq.s32.totalorder %v704_v60, %v2808_v52  ;;  %vm575_vm2 = vcmp.eq.s32.totalorder %v2855_v2, %v2797_v45  ;;  %vm576_vm3 = vcmp.eq.s32.totalorder %v2855_v2, %v2808_v52 }
  0xfa   : > { %v2031_v11 = vsel %vm747_vm8, 1.0, %v2459_v1  ;;  %v2032_v9 = vsel %vm748_vm9, 1.0, %v2459_v1  ;;  %v1973_v58 = vsel %vm401_vm14, 1.0, %v2459_v1  ;;  %v1974_v41 = vsel %vm402_vm15, 1.0, %v2459_v1 }
  0xfb   : > { %v3017_v8 = vadd.f32 %v2031_v11, %v667_v35  ;;  %v3019_v31 = vadd.f32 %v2032_v9, %v668_v4  ;;  %vm419_vm4 = vcmp.eq.s32.totalorder %v2789_v37, %v2797_v45  ;;  %vm420_vm5 = vcmp.eq.s32.totalorder %v2789_v37, %v2808_v52 }
  0xfc   : > { %v3029_v47 = vpop.permute.xlu1 %697  ;;  %v3031_v26 = vpop.permute.xlu0 %721  ;;  %906 = vperm.xlu1 %2355, %v2584_v14   ;;  %vm577_vm6 = vcmp.eq.s32.totalorder %v2824_v53, %v2797_v45  ;;  %vm578_vm7 = vcmp.eq.s32.totalorder %v2824_v53, %v2808_v52  ;;  %v2003_v2 = vsel %vm575_vm2, 1.0, %v2459_v1  ;;  %v2004_v4 = vsel %vm576_vm3, 1.0, %v2459_v1 }
  0xfd   : > { %4109 = vst [vmem:[#allocation15_spill] sm:$0xff] %v3019_v31  ;;  %v497_v43 = vadd.f32 %v1973_v58, %v1941_v24  ;;  %v498_v27 = vadd.f32 %v1974_v41, %v1942_v55  ;;  %v1991_v40 = vsel %vm419_vm4, 1.0, %v2459_v1  ;;  %v2005_v17 = vsel %vm577_vm6, 1.0, %v2459_v1 }
  0xfe   : > { %v2006_v24 = vsel %vm578_vm7, 1.0, %v2459_v1  ;;  %v671_v58 = vadd.f32 %v2003_v2, %v495_v19  ;;  %v4112_v41 = vmov 5   ;;  %vm595_vm12 = vcmp.eq.s32.totalorder %v2997_v56, %v2797_v45 }
  0xff   : > { %vm596_vm13 = vcmp.eq.s32.totalorder %v2997_v56, %v2808_v52  ;;  %v1959_v19 = vsel %vm243_vm0, 1.0, %v2459_v1  ;;  %v674_v0 = vadd.f32 %v2006_v24, %v498_v27  ;;  %vm217_vm4 = vcmp.eq.s32.totalorder %v2643_v21, %v2797_v45 }
 0x100   : > { %v3056_v60 = vpop.permute.xlu1 %700  ;;  %v725_v35 = vpop.permute.xlu0 %724  ;;  %909 = vperm.xlu1 %2355, %v2581_v13   ;;  %v515_v56 = vadd.f32 %v1991_v40, %v1959_v19  ;;  %v2024_v29 = vsel %vm596_vm13, 1.0, %v2459_v1  ;;  %v4113_v19 = vmov 6   ;;  %vm215_vm6 = vcmp.eq.s32.totalorder %v2652_v25, %v2797_v45 }
 0x101   : > { %vm761_vm8 = vcmp.eq.s32.totalorder %v725_v35, %v2797_v45  ;;  %vm762_vm9 = vcmp.eq.s32.totalorder %v725_v35, %v2808_v52  ;;  %v1992_v35 = vsel %vm420_vm5, 1.0, %v2459_v1  ;;  %vm218_vm5 = vcmp.eq.s32.totalorder %v2643_v21, %v2808_v52 }
 0x102   : > { %v2045_v11 = vsel %vm761_vm8, 1.0, %v2459_v1  ;;  %v2046_v9 = vsel %vm762_vm9, 1.0, %v2459_v1  ;;  %vm216_vm7 = vcmp.eq.s32.totalorder %v2652_v25, %v2808_v52  ;;  %vm391_vm8 = vcmp.eq.s32.totalorder %v2714_v46, %v2797_v45 }
 0x103   : > { %v3070_v30 = vadd.f32 %v2045_v11, %v2899_v39  ;;  %v3073_v53 = vadd.f32 %v2046_v9, %v2901_v61  ;;  %v672_v61 = vadd.f32 %v2004_v4, %v496_v15  ;;  %v1960_v15 = vsel %vm244_vm1, 1.0, %v2459_v1 }
 0x104   : > { %v3085_v55 = vpop.permute.xlu1 %718  ;;  %v710_v39 = vpop.permute.xlu0 %709  ;;  %2356 = vset.pattern.permute.xlu1 %v4112_v41  ;;  %v516_v9 = vadd.f32 %v1992_v35, %v1960_v15  ;;  %vm392_vm9 = vcmp.eq.s32.totalorder %v2714_v46, %v2808_v52  ;;  %v1934_v21 = vsel %vm218_vm5, 1.0, %v2459_v1  ;;  %v1932_v25 = vsel %vm216_vm7, 1.0, %v2459_v1 }
 0x105   : > { %4110 = vst [vmem:[#allocation16_spill] sm:$0xff] %v3070_v30  ;;  %4111 = vst [vmem:[#allocation17_spill] sm:$0xff] %v3073_v53  ;;  %vm751_vm10 = vcmp.eq.s32.totalorder %v710_v39, %v2797_v45  ;;  %vm752_vm11 = vcmp.eq.s32.totalorder %v710_v39, %v2808_v52  ;;  %1061 = vperm.xlu1 %2356, %v2547_v5   ;;  %v673_v39 = vadd.f32 %v2005_v17, %v497_v43 }
 0x106   : > { %v2035_v37 = vsel %vm751_vm10, 1.0, %v2459_v1  ;;  %v2036_v11 = vsel %vm752_vm11, 1.0, %v2459_v1  ;;  %v2023_v5 = vsel %vm595_vm12, 1.0, %v2459_v1  ;;  %vm393_vm10 = vcmp.eq.s32.totalorder %v2726_v50, %v2797_v45 }
 0x107   : > { %v3105_v2 = vadd.f32 %v2035_v37, %v671_v58  ;;  %v3107_v4 = vadd.f32 %v2036_v11, %v672_v61  ;;  %v691_v61 = vadd.f32 %v2023_v5, %v515_v56  ;;  %v692_v37 = vadd.f32 %v2024_v29, %v516_v9 }
 0x108   : > { %v713_v62 = vpop.permute.xlu0 %712  ;;  %vm231_vm11 = vcmp.eq.s32.totalorder %v2670_v32, %v2797_v45  ;;  %vm232_vm12 = vcmp.eq.s32.totalorder %v2670_v32, %v2808_v52  ;;  %vm235_vm13 = vcmp.eq.s32.totalorder %v2677_v34, %v2797_v45  ;;  %v1963_v46 = vsel %vm391_vm8, 1.0, %v2459_v1 }
 0x109   : > { %vm753_vm14 = vcmp.eq.s32.totalorder %v713_v62, %v2797_v45  ;;  %vm754_vm15 = vcmp.eq.s32.totalorder %v713_v62, %v2808_v52  ;;  %v871_v59 = vpop.permute.xlu1 %870  ;;  %1082 = vperm.xlu1 %2356, %v2584_v14   ;;  %vm568_vm5 = vcmp.eq.s32.totalorder %v2795_v44, %v2808_v52  ;;  %vm570_vm7 = vcmp.eq.s32.totalorder %v2803_v48, %v2808_v52 }
 0x10a   : > { %v2037_v42 = vsel %vm753_vm14, 1.0, %v2459_v1  ;;  %v2038_v58 = vsel %vm754_vm15, 1.0, %v2459_v1  ;;  %vm917_vm0 = vcmp.eq.s32.totalorder %v871_v59, %v2797_v45  ;;  %vm918_vm1 = vcmp.eq.s32.totalorder %v871_v59, %v2808_v52 }
 0x10b   : > { %v3118_v17 = vadd.f32 %v2037_v42, %v673_v39  ;;  %v3120_v43 = vadd.f32 %v2038_v58, %v674_v0  ;;  %v2057_v27 = vsel %vm917_vm0, 1.0, %v2459_v1  ;;  %v2058_v40 = vsel %vm918_vm1, 1.0, %v2459_v1 }
 0x10c   : > { %v3125_v62 = vadd.f32 %v2057_v27, %v2993_v3  ;;  %v3128_v35 = vadd.f32 %v2058_v40, %v2995_v12  ;;  %v740_v24 = vpop.permute.xlu0 %739  ;;  %v4114_v42 = vmov 3   ;;  %v1933_v40 = vsel %vm217_vm4, 1.0, %v2459_v1 }
 0x10d   : > { %vm771_vm2 = vcmp.eq.s32.totalorder %v740_v24, %v2797_v45  ;;  %vm772_vm3 = vcmp.eq.s32.totalorder %v740_v24, %v2808_v52  ;;  %v3132_v59 = vpop.permute.xlu1 %894  ;;  %2357 = vset.pattern.permute.xlu1 %v4113_v19  ;;  %v1931_v24 = vsel %vm215_vm6, 1.0, %v2459_v1  ;;  %vm236_vm14 = vcmp.eq.s32.totalorder %v2677_v34, %v2808_v52 }
 0x10e   : > { %v2055_v0 = vsel %vm771_vm2, 1.0, %v2459_v1  ;;  %v2056_v11 = vsel %vm772_vm3, 1.0, %v2459_v1  ;;  %1234 = vperm.xlu1 %2357, %v2552_v6   ;;  %vm394_vm15 = vcmp.eq.s32.totalorder %v2726_v50, %v2808_v52  ;;  %vm407_vm0 = vcmp.eq.s32.totalorder %v2764_v63, %v2797_v45 }
 0x10f   : > { %v3137_v3 = vadd.f32 %v2055_v0, %v691_v61  ;;  %v3139_v15 = vadd.f32 %v2056_v11, %v692_v37  ;;  %v1964_v61 = vsel %vm392_vm9, 1.0, %v2459_v1  ;;  %v1965_v37 = vsel %vm393_vm10, 1.0, %v2459_v1 }
 0x110   : > { %vm408_vm1 = vcmp.eq.s32.totalorder %v2764_v63, %v2808_v52  ;;  %v1947_v34 = vsel %vm231_vm11, 1.0, %v2459_v1  ;;  %v1948_v0 = vsel %vm232_vm12, 1.0, %v2459_v1  ;;  %vm411_vm2 = vcmp.eq.s32.totalorder %v2776_v10, %v2797_v45 }
 0x111   : > { %v3142_v12 = vpop.permute.xlu1 %897  ;;  %v3144_v29 = vpop.permute.xlu0 %1401  ;;  %vm412_vm3 = vcmp.eq.s32.totalorder %v2776_v10, %v2808_v52  ;;  %v1951_v50 = vsel %vm235_vm13, 1.0, %v2459_v1  ;;  %v1952_v11 = vsel %vm236_vm14, 1.0, %v2459_v1  ;;  %v488_v63 = vadd.f32 %v1964_v61, %v1932_v25 }
 0x112   : > { %1258 = vperm.xlu1 %2357, %v2584_v14   ;;  %v489_v51 = vadd.f32 %v1965_v37, %v1933_v40  ;;  %v1979_v38 = vsel %vm407_vm0, 1.0, %v2459_v1  ;;  %v1980_v53 = vsel %vm408_vm1, 1.0, %v2459_v1  ;;  %v1983_v30 = vsel %vm411_vm2, 1.0, %v2459_v1 }
 0x113   : > { %v1984_v10 = vsel %vm412_vm3, 1.0, %v2459_v1  ;;  %vm567_vm4 = vcmp.eq.s32.totalorder %v2795_v44, %v2797_v45  ;;  %vm569_vm6 = vcmp.eq.s32.totalorder %v2803_v48, %v2797_v45  ;;  %vm583_vm8 = vcmp.eq.s32.totalorder %v2921_v22, %v2797_v45 }
 0x114   : > { %vm584_vm9 = vcmp.eq.s32.totalorder %v2921_v22, %v2808_v52  ;;  %v503_v40 = vadd.f32 %v1979_v38, %v1947_v34  ;;  %v504_v25 = vadd.f32 %v1980_v53, %v1948_v0  ;;  %vm587_vm10 = vcmp.eq.s32.totalorder %v2951_v20, %v2797_v45 }
 0x115   : > { %v3147_v56 = vpop.permute.xlu0 %1404  ;;  %v508_v61 = vadd.f32 %v1984_v10, %v1952_v11  ;;  %v1995_v37 = vsel %vm567_vm4, 1.0, %v2459_v1  ;;  %v1996_v48 = vsel %vm568_vm5, 1.0, %v2459_v1  ;;  %v1997_v49 = vsel %vm569_vm6, 1.0, %v2459_v1 }
 0x116   : > { %v3149_v9 = vpop.permute.xlu1 %1049  ;;  %1261 = vperm.xlu1 %2357, %v2581_v13   ;;  %v1998_v22 = vsel %vm570_vm7, 1.0, %v2459_v1  ;;  %v2011_v38 = vsel %vm583_vm8, 1.0, %v2459_v1  ;;  %v2012_v53 = vsel %vm584_vm9, 1.0, %v2459_v1  ;;  %vm588_vm11 = vcmp.eq.s32.totalorder %v2951_v20, %v2808_v52 }
 0x117   : > { %vm743_vm14 = vcmp.eq.s32.totalorder %v3029_v47, %v2797_v45  ;;  %vm757_vm2 = vcmp.eq.s32.totalorder %v3085_v55, %v2797_v45  ;;  %vm758_vm3 = vcmp.eq.s32.totalorder %v3085_v55, %v2808_v52  ;;  %vm759_vm4 = vcmp.eq.s32.totalorder %v3031_v26, %v2797_v45 }
 0x118   : > { %vm760_vm5 = vcmp.eq.s32.totalorder %v3031_v26, %v2808_v52  ;;  %vm745_vm6 = vcmp.eq.s32.totalorder %v3056_v60, %v2797_v45  ;;  %vm933_vm9 = vcmp.eq.s32.totalorder %v3132_v59, %v2797_v45 }
 0x119   : > { %v3152_v39 = vpop.permute.xlu0 %1431 }
 0x11a   : > { %v3154_v5 = vpop.permute.xlu1 %1070  ;;  %2358 = vset.pattern.permute.xlu1 %v4114_v42  ;;  %v487_v42 = vadd.f32 %v1963_v46, %v1931_v24  ;;  %v507_v46 = vadd.f32 %v1983_v30, %v1951_v50  ;;  %v2015_v30 = vsel %vm587_vm10, 1.0, %v2459_v1  ;;  %v3256_v50 = vadd.f32 %v1997_v49, %v489_v51 }
 0x11b   : > { %715 = vperm.xlu1 %2358, %v2555_v7   ;;  %v2016_v49 = vsel %vm588_vm11, 1.0, %v2459_v1  ;;  %vm934_vm10 = vcmp.eq.s32.totalorder %v3132_v59, %v2808_v52  ;;  %vm935_vm11 = vcmp.eq.s32.totalorder %v3142_v12, %v2797_v45 }
 0x11c   : > { %v3273_v51 = vadd.f32 %v2015_v30, %v507_v46  ;;  %v2027_v46 = vsel %vm743_vm14, 1.0, %v2459_v1  ;;  %v2074_v26 = vsel %vm934_vm10, 1.0, %v2459_v1  ;;  %vm1109_vm14 = vcmp.eq.s32.totalorder %v3154_v5, %v2797_v45 }
 0x11d   : > { %v3158_v58 = vpop.permute.xlu0 %1413 }
 0x11e   : > { %4115 = vst [vmem:[#allocation18_spill] sm:$0xff] %v3158_v58  ;;  %v1966_v58 = vsel %vm394_vm15, 1.0, %v2459_v1  ;;  %vm744_vm15 = vcmp.eq.s32.totalorder %v3029_v47, %v2808_v52 }
 0x11f   : > { %v3160_v27 = vpop.permute.xlu1 %1222  ;;  %736 = vperm.xlu1 %2358, %v2592_v16  }
 0x122   : > { %v3175_v7 = vpop.permute.xlu0 %873 }
 0x123   : > { %v3181_v16 = vpop.permute.xlu1 %1246  ;;  %2360 = vset.pattern.permute.xlu1 %v4104_v57 }
 0x124   : > { %1410 = vperm.xlu1 %2360, %v2552_v6  }
 0x126   : > { %v3204_v32 = vpop.permute.xlu0 %876 }
 0x127   : > { %v3212_v6 = vpop.permute.xlu1 %1249 }
 0x128   : > { %1434 = vperm.xlu1 %2360, %v2584_v14   ;;  %v490_v14 = vadd.f32 %v1966_v58, %v1934_v21  ;;  %v3252_v21 = vadd.f32 %v1996_v48, %v488_v63  ;;  %v680_v63 = vadd.f32 %v2012_v53, %v504_v25  ;;  %v2042_v48 = vsel %vm758_vm3, 1.0, %v2459_v1 }
 0x12a   : > { %v3226_v24 = vpop.permute.xlu0 %903  ;;  %v3258_v11 = vadd.f32 %v1998_v22, %v490_v14  ;;  %v3276_v14 = vld [vmem:[%s2530_s25 + $0x38] sm:$0xff] }
 0x12c   : > { %v3238_v44 = vpop.permute.xlu1 %727  ;;  %1437 = vperm.xlu1 %2360, %v2581_v13   ;;  %v663_v13 = vadd.f32 %v1995_v37, %v487_v42  ;;  %v679_v42 = vadd.f32 %v2011_v38, %v503_v40  ;;  %v2028_v37 = vsel %vm744_vm15, 1.0, %v2459_v1  ;;  %vm1110_vm15 = vcmp.eq.s32.totalorder %v3154_v5, %v2808_v52 }
 0x12d   : > { %v3385_v59 = vadd.f32 %v2028_v37, %v3252_v21 }
 0x12e   : > { %v886_v58 = vpop.permute.xlu0 %885 }
 0x12f   : > { %vm927_vm12 = vcmp.eq.s32.totalorder %v886_v58, %v2797_v45  ;;  %vm928_vm13 = vcmp.eq.s32.totalorder %v886_v58, %v2808_v52 }
 0x130   : > { %v2067_v34 = vsel %vm927_vm12, 1.0, %v2459_v1  ;;  %v2068_v0 = vsel %vm928_vm13, 1.0, %v2459_v1  ;;  %2362 = vset.pattern.permute.xlu1 %v4108_v36  ;;  %vm936_vm12 = vcmp.eq.s32.totalorder %v3142_v12, %v2808_v52  ;;  %vm746_vm13 = vcmp.eq.s32.totalorder %v3056_v60, %v2808_v52 }
 0x131   : > { %v3261_v10 = vadd.f32 %v2067_v34, %v3105_v2  ;;  %v3264_v31 = vadd.f32 %v2068_v0, %v3107_v4  ;;  %v3267_v58 = vpop.permute.xlu1 %1398  ;;  %891 = vperm.xlu1 %2362, %v3276_v14   ;;  %v3291_v4 = vadd.f32 %v2016_v49, %v508_v61  ;;  %v3310_v61 = vld [vmem:[%s2530_s25 + $0x70] sm:$0xff]  ;;  %v3341_v34 = vadd.f32 %v2027_v46, %v663_v13 }
 0x132   : > { %v889_v2 = vpop.permute.xlu0 %888  ;;  %v2043_v0 = vsel %vm759_vm4, 1.0, %v2459_v1  ;;  %v2044_v49 = vsel %vm760_vm5, 1.0, %v2459_v1  ;;  %v2073_v13 = vsel %vm933_vm9, 1.0, %v2459_v1  ;;  %v2106_v60 = vsel %vm1110_vm15, 1.0, %v2459_v1 }
 0x133   : > { %vm929_vm0 = vcmp.eq.s32.totalorder %v889_v2, %v2797_v45  ;;  %vm930_vm1 = vcmp.eq.s32.totalorder %v889_v2, %v2808_v52  ;;  %v3368_v2 = vld [vmem:[%s2530_s25 + $0x30] sm:$0xff]  ;;  %v855_v46 = vadd.f32 %v2043_v0, %v679_v42  ;;  %v2105_v42 = vsel %vm1109_vm14, 1.0, %v2459_v1 }
 0x134   : > { %v2069_v20 = vsel %vm929_vm0, 1.0, %v2459_v1  ;;  %v2070_v36 = vsel %vm930_vm1, 1.0, %v2459_v1  ;;  %vm1447_vm0 = vcmp.eq.s32.totalorder %v3144_v29, %v2797_v45  ;;  %vm1285_vm1 = vcmp.eq.s32.totalorder %v3181_v16, %v2797_v45 }
 0x135   : > { %v3296_v47 = vadd.f32 %v2069_v20, %v3118_v17  ;;  %v3299_v40 = vadd.f32 %v2070_v36, %v3120_v43  ;;  %v3301_v25 = vpop.permute.xlu1 %1422  ;;  %912 = vperm.xlu1 %2362, %v3310_v61   ;;  %v2041_v43 = vsel %vm757_vm2, 1.0, %v2459_v1  ;;  %v854_v20 = vadd.f32 %v2042_v48, %v2869_v23 }
 0x136   : > { %v916_v17 = vpop.permute.xlu0 %915  ;;  %v2076_v36 = vsel %vm936_vm12, 1.0, %v2459_v1  ;;  %v2030_v23 = vsel %vm746_vm13, 1.0, %v2459_v1  ;;  %vm1287_vm2 = vcmp.eq.s32.totalorder %v3212_v6, %v2797_v45  ;;  %vm1286_vm4 = vcmp.eq.s32.totalorder %v3181_v16, %v2808_v52 }
 0x137   : > { %vm947_vm7 = vcmp.eq.s32.totalorder %v916_v17, %v2797_v45  ;;  %vm948_vm8 = vcmp.eq.s32.totalorder %v916_v17, %v2808_v52  ;;  %v856_v17 = vadd.f32 %v2044_v49, %v680_v63  ;;  %v1030_v48 = vadd.f32 %v2074_v26, %v854_v20 }
 0x138   : > { %v2087_v22 = vsel %vm947_vm7, 1.0, %v2459_v1  ;;  %v2088_v38 = vsel %vm948_vm8, 1.0, %v2459_v1  ;;  %vm1288_vm5 = vcmp.eq.s32.totalorder %v3212_v6, %v2808_v52  ;;  %vm1461_vm7 = vcmp.eq.s32.totalorder %v3301_v25, %v2797_v45 }
 0x139   : > { %v3334_v55 = vadd.f32 %v2087_v22, %v3137_v3  ;;  %v3337_v53 = vadd.f32 %v2088_v38, %v3139_v15  ;;  %v3339_v30 = vpop.permute.xlu1 %1425  ;;  %2364 = vset.pattern.permute.xlu1 %v4112_v41  ;;  %v2029_v3 = vsel %vm745_vm6, 1.0, %v2459_v1  ;;  %v853_v15 = vadd.f32 %v2041_v43, %v2867_v33 }
 0x13a   : > { %1064 = vperm.xlu1 %2364, %v3368_v2   ;;  %v2075_v33 = vsel %vm935_vm11, 1.0, %v2459_v1  ;;  %v3394_v43 = vadd.f32 %v2029_v3, %v3256_v50  ;;  %v1032_v21 = vadd.f32 %v2076_v36, %v856_v17  ;;  %vm1463_vm8 = vcmp.eq.s32.totalorder %v3339_v30, %v2797_v45 }
 0x13b   : > { %v3371_v41 = vpop.permute.xlu0 %1046  ;;  %v1029_v12 = vadd.f32 %v2073_v13, %v853_v15  ;;  %v1031_v38 = vadd.f32 %v2075_v33, %v855_v46  ;;  %vm1448_vm9 = vcmp.eq.s32.totalorder %v3144_v29, %v2808_v52  ;;  %v2137_v49 = vsel %vm1285_vm1, 1.0, %v2459_v1  ;;  %v3426_v13 = vld [vmem:[%s2530_s25 + $0x78] sm:$0xff]  ;;  %s135_s25 = sand.u32 1, %s2441_s10  }
 0x13c   : > { %v2139_v3 = vsel %vm1287_vm2, 1.0, %v2459_v1  ;;  %v1206_v33 = vadd.f32 %v2106_v60, %v1030_v48  ;;  %vm1462_vm10 = vcmp.eq.s32.totalorder %v3301_v25, %v2808_v52  ;;  %v2138_v46 = vsel %vm1286_vm4, 1.0, %v2459_v1  ;;  %s1926_s21 = sshll.u32 %s135_s25, 7  ;;  %s4036_s29 = scalar_lea.sflag [#allocation3], %s135_s25 }
 0x13d   : > { %v1205_v20 = vadd.f32 %v2105_v42, %v1029_v12  ;;  %v2140_v17 = vsel %vm1288_vm5, 1.0, %v2459_v1  ;;  %v2169_v12 = vsel %vm1461_vm7, 1.0, %v2459_v1  ;;  %v2171_v48 = vsel %vm1463_vm8, 1.0, %v2459_v1  ;;  %s4007_s22 = scalar_lea.vmem [#allocation2], %s1926_s21 }
 0x13e   : > { %v3396_v22 = vpop.permute.xlu1 %879  ;;  %1088 = vperm.xlu1 %2364, %v3310_v61   ;;  %vm1464_vm11 = vcmp.eq.s32.totalorder %v3339_v30, %v2808_v52  ;;  %v3452_v42 = vadd.f32 %v2030_v23, %v3258_v11  ;;  %v3458_v6 = vsel %vm1447_vm0, 1.0, %v2459_v1  ;;  %v3464_v25 = vsel %vm1448_vm9, 1.0, %v2459_v1  ;;  %s1860_s24 = sshll.u32 %s4007_s22, 4  ;;  %s4031_s24 = int_to_ptr.vmem [resolvable:$true] %s1860_s24 }
 0x13f   : > { %v1074_v5 = vpop.permute.xlu0 %1073  ;;  %vm1449_vm12 = vcmp.eq.s32.totalorder %v3147_v56, %v2797_v45  ;;  %vm1450_vm13 = vcmp.eq.s32.totalorder %v3147_v56, %v2808_v52  ;;  %v1382_v23 = vadd.f32 %v2138_v46, %v1206_v33  ;;  %vm1095_vm14 = vcmp.eq.s32.totalorder %v3149_v9, %v2797_v45  ;;  %s2389_s13 = scalar_lea.vmem %s4031_s24, 2048  ;;  %p2396_p0 = scmp.lt.s32.totalorder %s4031_s24, %s2394_s3 }
 0x140   : > { %vm1111_vm3 = vcmp.eq.s32.totalorder %v1074_v5, %v2797_v45  ;;  %vm1112_vm6 = vcmp.eq.s32.totalorder %v1074_v5, %v2808_v52  ;;  %v2170_v5 = vsel %vm1462_vm10, 1.0, %v2459_v1  ;;  %vm919_vm15 = vcmp.eq.s32.totalorder %v3175_v7, %v2797_v45  ;;  %p2390_p11 = scmp.ne.s32.totalorder %s4031_s24, %s2389_s13  ;;  %p2397_p1 = scmp.lt.s32.totalorder %s2395_s4, %s2389_s13 }
 0x141   : > { %v2107_v50 = vsel %vm1111_vm3, 1.0, %v2459_v1  ;;  %v2108_v63 = vsel %vm1112_vm6, 1.0, %v2459_v1  ;;  %vm920_vm0 = vcmp.eq.s32.totalorder %v3175_v7, %v2808_v52  ;;  %vm763_vm1 = vcmp.eq.s32.totalorder %v3238_v44, %v2797_v45 }
 0x142   : > { %v1207_v37 = vadd.f32 %v2107_v50, %v1031_v38  ;;  %v3419_v0 = vpop.permute.xlu1 %900  ;;  %v1208_v15 = vadd.f32 %v2108_v63, %v1032_v21  ;;  %1091 = vperm.xlu1 %2364, %v3426_v13   ;;  %v1381_v38 = vadd.f32 %v2137_v49, %v1205_v20  ;;  %v1558_v29 = vadd.f32 %v2170_v5, %v1382_v23  ;;  %p2391_p12 = pnand %p2390_p11, %p2516_p5  ;;  %p2398_p2 = por %p2397_p1, %p2396_p0 }
 0x143   : > { %v3429_v26 = vpop.permute.xlu0 %1055  ;;  %vm1096_vm2 = vcmp.eq.s32.totalorder %v3149_v9, %v2808_v52  ;;  %v3492_v63 = vsel %vm1449_vm12, 1.0, %v2459_v1  ;;  %vm1093_vm3 = vcmp.eq.s32.totalorder %v3371_v41, %v2797_v45  ;;  %v2059_v49 = vsel %vm919_vm15, 1.0, %v2459_v1 }
 0x144   : > { %v1383_v36 = vadd.f32 %v2139_v3, %v1207_v37  ;;  %v1384_v16 = vadd.f32 %v2140_v17, %v1208_v15  ;;  %v1557_v50 = vadd.f32 %v2169_v12, %v1381_v38  ;;  %v3495_v37 = vsel %vm1450_vm13, 1.0, %v2459_v1  ;;  %p2392_p13 = pneg %p2391_p12 }
 0x145   : > { %v2060_v3 = vsel %vm920_vm0, 1.0, %v2459_v1  ;;  %vm1094_vm4 = vcmp.eq.s32.totalorder %v3371_v41, %v2808_v52  ;;  %v2091_v20 = vsel %vm1095_vm14, 1.0, %v2459_v1  ;;  %vm921_vm5 = vcmp.eq.s32.totalorder %v3204_v32, %v2797_v45 }
 0x146   : > { %v1559_v21 = vadd.f32 %v2171_v48, %v1383_v36  ;;  %2366 = vset.pattern.permute.xlu1 %v4113_v19  ;;  %v2172_v19 = vsel %vm1464_vm11, 1.0, %v2459_v1  ;;  %vm922_vm6 = vcmp.eq.s32.totalorder %v3204_v32, %v2808_v52  ;;  %v2047_v33 = vsel %vm763_vm1, 1.0, %v2459_v1  ;;  %p2399_p3 = pnand %p2398_p2, %p2392_p13 }
 0x147   : > { %v3468_v60 = vpop.permute.xlu1 %1052  ;;  %v3470_v11 = vpop.permute.xlu0 %1058  ;;  %1243 = vperm.xlu1 %2366, %v3276_v14   ;;  %v1560_v56 = vadd.f32 %v2172_v19, %v1384_v16  ;;  %vm1269_vm7 = vcmp.eq.s32.totalorder %v3160_v27, %v2797_v45  ;;  %vm939_vm8 = vcmp.eq.s32.totalorder %v3226_v24, %v2797_v45  ;;  %vm764_vm9 = vcmp.eq.s32.totalorder %v3238_v44, %v2808_v52 }
 0x148   : > { %v1581_v14 = vpack.c.bf16 %v1559_v21, %v1557_v50  ;;  %v2089_v41 = vsel %vm1093_vm3, 1.0, %v2459_v1  ;;  %vm1270_vm10 = vcmp.eq.s32.totalorder %v3160_v27, %v2808_v52  ;;  %v1015_v36 = vadd.f32 %v2059_v49, %v3341_v34 }
 0x149   : > { %v1582_v15 = vpack.c.bf16 %v1560_v56, %v1558_v29  ;;  %v1016_v46 = vadd.f32 %v2060_v3, %v3385_v59  ;;  %v2090_v17 = vsel %vm1094_vm4, 1.0, %v2459_v1  ;;  %v2092_v38 = vsel %vm1096_vm2, 1.0, %v2459_v1 }
 0x14a   : > { %v2061_v16 = vsel %vm921_vm5, 1.0, %v2459_v1  ;;  %v2062_v34 = vsel %vm922_vm6, 1.0, %v2459_v1  ;;  %v859_v59 = vadd.f32 %v2047_v33, %v3273_v51  ;;  %vm940_vm11 = vcmp.eq.s32.totalorder %v3226_v24, %v2808_v52 }
 0x14b   : > { %v3499_v7 = vpop.permute.xlu1 %1076  ;;  %v3501_v30 = vpop.permute.xlu0 %1085  ;;  %1264 = vperm.xlu1 %2366, %v3310_v61   ;;  %1781 = vmatprep.mubr.bf16.mxu1 %v1582_v15  ;;  %v2079_v9 = vsel %vm939_vm8, 1.0, %v2459_v1  ;;  %v2048_v21 = vsel %vm764_vm9, 1.0, %v2459_v1  ;;  %v1189_v32 = vadd.f32 %v2089_v41, %v3125_v62  ;;  %vm1467_vm12 = vcmp.eq.s32.totalorder %v3152_v39, %v2797_v45 }
 0x14c   : > { %1782 = vmatmul.mubr.bf16.vlgmr.msra.gmra.mxu1 %v1581_v14  ;;  %v2122_v24 = vsel %vm1270_vm10, 1.0, %v2459_v1  ;;  %v1190_v44 = vadd.f32 %v2090_v17, %v3128_v35  ;;  %v1017_v51 = vadd.f32 %v2061_v16, %v3394_v43  ;;  %vm1097_vm13 = vcmp.eq.s32.totalorder %v3468_v60, %v2797_v45 }
 0x14d   : > { %v1191_v62 = vadd.f32 %v2091_v20, %v1015_v36  ;;  %vm1468_vm14 = vcmp.eq.s32.totalorder %v3152_v39, %v2808_v52  ;;  %v1018_v5 = vadd.f32 %v2062_v34, %v3452_v42  ;;  %v2080_v23 = vsel %vm940_vm11, 1.0, %v2459_v1 }
 0x14e   : > { %v860_v50 = vadd.f32 %v2048_v21, %v3291_v4  ;;  %v1035_v27 = vadd.f32 %v2079_v9, %v859_v59  ;;  %vm221_vm15 = vcmp.eq.s32.totalorder %v2659_v28, %v2797_v45  ;;  %vm222_vm0 = vcmp.eq.s32.totalorder %v2659_v28, %v2808_v52 }
 0x14f   : > { %v1080_v12 = vpop.permute.xlu1 %1079  ;;  %v3532_v48 = vpop.permute.xlu0 %1067  ;;  %2367 = vset.pattern.permute.xlu1 %v4104_v57  ;;  %v2121_v57 = vsel %vm1269_vm7, 1.0, %v2459_v1  ;;  %vm1445_vm1 = vcmp.eq.s32.totalorder %v3267_v58, %v2797_v45  ;;  %vm1446_vm2 = vcmp.eq.s32.totalorder %v3267_v58, %v2808_v52  ;;  %vm1098_vm3 = vcmp.eq.s32.totalorder %v3468_v60, %v2808_v52 }
 0x150   : > { %1416 = vperm.xlu1 %2367, %v3368_v2   ;;  %v1192_v2 = vadd.f32 %v2092_v38, %v1016_v46  ;;  %v1365_v35 = vadd.f32 %v2121_v57, %v1189_v32  ;;  %vm397_vm4 = vcmp.eq.s32.totalorder %v2738_v54, %v2797_v45  ;;  %vm398_vm5 = vcmp.eq.s32.totalorder %v2738_v54, %v2808_v52 }
 0x151   : > { %v2093_v43 = vsel %vm1097_vm13, 1.0, %v2459_v1  ;;  %v1366_v42 = vadd.f32 %v2122_v24, %v1190_v44  ;;  %vm1115_vm8 = vcmp.eq.s32.totalorder %v1080_v12, %v2797_v45  ;;  %vm1116_vm9 = vcmp.eq.s32.totalorder %v1080_v12, %v2808_v52 }
 0x152   : > { %v2153_v56 = vsel %vm1445_vm1, 1.0, %v2459_v1  ;;  %v2094_v60 = vsel %vm1098_vm3, 1.0, %v2459_v1  ;;  %v2154_v15 = vsel %vm1446_vm2, 1.0, %v2459_v1  ;;  %v1193_v20 = vadd.f32 %v2093_v43, %v1017_v51 }
 0x153   : > { %v1036_v33 = vadd.f32 %v2080_v23, %v860_v50  ;;  %v1541_v36 = vadd.f32 %v2153_v56, %v1365_v35  ;;  %v2111_v46 = vsel %vm1115_vm8, 1.0, %v2459_v1  ;;  %v2112_v17 = vsel %vm1116_vm9, 1.0, %v2459_v1 }
 0x154   : > { %v3579_v19 = vpop.permute.xlu1 %1231  ;;  %1440 = vperm.xlu1 %2367, %v3310_v61   ;;  %v1226_v4 = vpop.permute.xlu0 %1225  ;;  %v1194_v38 = vadd.f32 %v2094_v60, %v1018_v5  ;;  %v1542_v16 = vadd.f32 %v2154_v15, %v1366_v42  ;;  %v2175_v21 = vsel %vm1467_vm12, 1.0, %v2459_v1  ;;  %v1937_v23 = vsel %vm221_vm15, 1.0, %v2459_v1  ;;  %v4116_v60 = vld [vmem:[#allocation15_spill] sm:$0xff] }
 0x155   : > { %vm1271_vm6 = vcmp.eq.s32.totalorder %v1226_v4, %v2797_v45  ;;  %vm1272_vm7 = vcmp.eq.s32.totalorder %v1226_v4, %v2808_v52  ;;  %v1212_v32 = vadd.f32 %v2112_v17, %v1036_v33  ;;  %v1938_v50 = vsel %vm222_vm0, 1.0, %v2459_v1 }
 0x156   : > { %v2123_v61 = vsel %vm1271_vm6, 1.0, %v2459_v1  ;;  %v2124_v29 = vsel %vm1272_vm7, 1.0, %v2459_v1  ;;  %v1970_v35 = vsel %vm398_vm5, 1.0, %v2459_v1  ;;  %vm923_vm12 = vcmp.eq.s32.totalorder %v3396_v22, %v2797_v45 }
 0x157   : > { %v1367_v14 = vadd.f32 %v2123_v61, %v1191_v62  ;;  %v1368_v49 = vadd.f32 %v2124_v29, %v1192_v2  ;;  %v2176_v62 = vsel %vm1468_vm14, 1.0, %v2459_v1  ;;  %vm924_vm14 = vcmp.eq.s32.totalorder %v3396_v22, %v2808_v52 }
 0x158   : > { %v3611_v3 = vpop.permute.xlu1 %1252  ;;  %1443 = vperm.xlu1 %2367, %v3426_v13   ;;  %v1229_v41 = vpop.permute.xlu0 %1228  ;;  %vm1099_vm15 = vcmp.eq.s32.totalorder %v3429_v26, %v2797_v45  ;;  %vm1100_vm0 = vcmp.eq.s32.totalorder %v3429_v26, %v2808_v52  ;;  %v3678_v42 = vadd.f32 %v1970_v35, %v1938_v50  ;;  %v2063_v61 = vsel %vm923_vm12, 1.0, %v2459_v1 }
 0x159   : > { %v1543_v12 = vadd.f32 %v3458_v6, %v1367_v14  ;;  %vm1273_vm10 = vcmp.eq.s32.totalorder %v1229_v41, %v2797_v45  ;;  %vm1274_vm11 = vcmp.eq.s32.totalorder %v1229_v41, %v2808_v52  ;;  %v1544_v13 = vadd.f32 %v3464_v25, %v1368_v49 }
 0x15a   : > { %v2125_v58 = vsel %vm1273_vm10, 1.0, %v2459_v1  ;;  %v2126_v34 = vsel %vm1274_vm11, 1.0, %v2459_v1  ;;  %v1211_v6 = vadd.f32 %v2111_v46, %v1035_v27  ;;  %v2064_v22 = vsel %vm924_vm14, 1.0, %v2459_v1  ;;  %v4118_v46 = vld [vmem:[#allocation16_spill] sm:$0xff] }
 0x15b   : > { %v1369_v59 = vadd.f32 %v2125_v58, %v1193_v20  ;;  %v1573_v9 = vpack.c.bf16 %v1543_v12, %v1541_v36  ;;  %v1370_v57 = vadd.f32 %v2126_v34, %v1194_v38  ;;  %v1574_v25 = vpack.c.bf16 %v1544_v13, %v1542_v16  ;;  %v4119_v12 = vld [vmem:[#allocation17_spill] sm:$0xff]  ;;  %v4120_v13 = vld [vmem:[#allocation6_spill] sm:$0xff] }
 0x15c   : > { %v1256_v24 = vpop.permute.xlu0 %1255  ;;  %vm937_vm2 = vcmp.eq.s32.totalorder %v3419_v0, %v2797_v45  ;;  %vm938_vm3 = vcmp.eq.s32.totalorder %v3419_v0, %v2808_v52  ;;  %vm1276_vm5 = vcmp.eq.s32.totalorder %v3579_v19, %v2808_v52  ;;  %vm415_vm6 = vcmp.eq.s32.totalorder %v2783_v18, %v2797_v45 }
 0x15d   : > { %v3631_v44 = vadd.f32 %v3492_v63, %v1369_v59  ;;  %vm1291_vm13 = vcmp.eq.s32.totalorder %v1256_v24, %v2797_v45  ;;  %vm1292_vm1 = vcmp.eq.s32.totalorder %v1256_v24, %v2808_v52  ;;  %v3635_v51 = vpop.permute.xlu1 %706  ;;  %v3642_v2 = vadd.f32 %v3495_v37, %v1370_v57  ;;  %1749 = vmatprep.mubr.bf16.mxu0 %v1574_v25 }
 0x15e   : > { %v2143_v5 = vsel %vm1291_vm13, 1.0, %v2459_v1  ;;  %v2144_v63 = vsel %vm1292_vm1, 1.0, %v2459_v1  ;;  %v1969_v37 = vsel %vm397_vm4, 1.0, %v2459_v1  ;;  %1750 = vmatmul.mubr.bf16.vlgmr.msra.gmra.mxu0 %v1573_v9  ;;  %vm1275_vm4 = vcmp.eq.s32.totalorder %v3579_v19, %v2797_v45 }
 0x15f   : > { %v1387_v27 = vadd.f32 %v2143_v5, %v1211_v6  ;;  %v1388_v39 = vadd.f32 %v2144_v63, %v1212_v32  ;;  %v3676_v54 = vadd.f32 %v1969_v37, %v1937_v23  ;;  %vm416_vm7 = vcmp.eq.s32.totalorder %v2783_v18, %v2808_v52  ;;  %v4121_v18 = vld [vmem:[#allocation14_spill] sm:$0xff] }
 0x160   : > { %v2095_v26 = vsel %vm1099_vm15, 1.0, %v2459_v1  ;;  %v2096_v29 = vsel %vm1100_vm0, 1.0, %v2459_v1  ;;  %v1019_v0 = vadd.f32 %v2063_v61, %v3017_v8  ;;  %v1020_v14 = vadd.f32 %v2064_v22, %v4116_v60  ;;  %v4117_v8 = vld [vmem:[#allocation8_spill] sm:$0xff] }
 0x161   : > { %v3666_v28 = vadd.f32 %v2175_v21, %v1387_v27  ;;  %v3668_v4 = vadd.f32 %v2176_v62, %v1388_v39  ;;  %v3670_v43 = vpop.permute.xlu1 %730  ;;  %vm1113_vm8 = vcmp.eq.s32.totalorder %v3499_v7, %v2797_v45  ;;  %vm1114_vm9 = vcmp.eq.s32.totalorder %v3499_v7, %v2808_v52 }
 0x162   : > { %v2077_v19 = vsel %vm937_vm2, 1.0, %v2459_v1  ;;  %v2078_v49 = vsel %vm938_vm3, 1.0, %v2459_v1  ;;  %v2127_v15 = vsel %vm1275_vm4, 1.0, %v2459_v1  ;;  %v2128_v20 = vsel %vm1276_vm5, 1.0, %v2459_v1 }
 0x163   : > { %v1195_v33 = vadd.f32 %v2095_v26, %v1019_v0  ;;  %v1196_v41 = vadd.f32 %v2096_v29, %v1020_v14  ;;  %vm1289_vm10 = vcmp.eq.s32.totalorder %v3611_v3, %v2797_v45  ;;  %vm1290_vm11 = vcmp.eq.s32.totalorder %v3611_v3, %v2808_v52 }
 0x164   : > { %vm573_vm13 = vcmp.eq.s32.totalorder %v4117_v8, %v2797_v45  ;;  %vm574_vm1 = vcmp.eq.s32.totalorder %v4117_v8, %v2808_v52  ;;  %v2109_v7 = vsel %vm1113_vm8, 1.0, %v2459_v1  ;;  %v2110_v36 = vsel %vm1114_vm9, 1.0, %v2459_v1 }
 0x165   : > { %v3696_v56 = vpop.permute.xlu1 %733  ;;  %v1033_v17 = vadd.f32 %v2077_v19, %v4118_v46  ;;  %v1034_v38 = vadd.f32 %v2078_v49, %v4119_v12  ;;  %v1371_v58 = vadd.f32 %v2127_v15, %v1195_v33  ;;  %v1372_v16 = vadd.f32 %v2128_v20, %v1196_v41 }
 0x166   : > { %v2141_v59 = vsel %vm1289_vm10, 1.0, %v2459_v1  ;;  %v2142_v3 = vsel %vm1290_vm11, 1.0, %v2459_v1  ;;  %vm239_vm15 = vcmp.eq.s32.totalorder %v4120_v13, %v2797_v45  ;;  %vm240_vm0 = vcmp.eq.s32.totalorder %v4120_v13, %v2808_v52  ;;  %v1238_v13 = vpop.permute.xlu0 %1237 }
 0x167   : > { %v1209_v9 = vadd.f32 %v2109_v7, %v1033_v17  ;;  %v1210_v21 = vadd.f32 %v2110_v36, %v1034_v38  ;;  %v2001_v57 = vsel %vm573_vm13, 1.0, %v2459_v1  ;;  %v2002_v24 = vsel %vm574_vm1, 1.0, %v2459_v1 }
 0x168   : > { %vm749_vm2 = vcmp.eq.s32.totalorder %v3635_v51, %v2797_v45  ;;  %vm750_vm3 = vcmp.eq.s32.totalorder %v3635_v51, %v2808_v52  ;;  %v1987_v39 = vsel %vm415_vm6, 1.0, %v2459_v1  ;;  %v1988_v37 = vsel %vm416_vm7, 1.0, %v2459_v1 }
 0x169   : > { %v1385_v5 = vadd.f32 %v2141_v59, %v1209_v9  ;;  %v1386_v63 = vadd.f32 %v2142_v3, %v1210_v21  ;;  %v2033_v61 = vsel %vm749_vm2, 1.0, %v2459_v1  ;;  %v669_v26 = vadd.f32 %v2001_v57, %v3676_v54 }
 0x16a   : > { %v1408_v34 = vpop.permute.xlu1 %1407  ;;  %v670_v29 = vadd.f32 %v2002_v24, %v3678_v42  ;;  %vm1101_vm6 = vcmp.eq.s32.totalorder %v3470_v11, %v2797_v45  ;;  %vm1102_vm7 = vcmp.eq.s32.totalorder %v3470_v11, %v2808_v52  ;;  %vm591_vm8 = vcmp.eq.s32.totalorder %v4121_v18, %v2797_v45 }
 0x16b   : > { %vm1451_vm12 = vcmp.eq.s32.totalorder %v1408_v34, %v2797_v45  ;;  %vm1452_vm14 = vcmp.eq.s32.totalorder %v1408_v34, %v2808_v52  ;;  %vm592_vm9 = vcmp.eq.s32.totalorder %v4121_v18, %v2808_v52  ;;  %v845_v14 = vadd.f32 %v2033_v61, %v669_v26 }
 0x16c   : > { %v2159_v6 = vsel %vm1451_vm12, 1.0, %v2459_v1  ;;  %v2160_v32 = vsel %vm1452_vm14, 1.0, %v2459_v1  ;;  %v2097_v11 = vsel %vm1101_vm6, 1.0, %v2459_v1  ;;  %v2098_v19 = vsel %vm1102_vm7, 1.0, %v2459_v1 }
 0x16d   : > { %v1547_v25 = vadd.f32 %v2159_v6, %v1371_v58  ;;  %v1548_v62 = vadd.f32 %v2160_v32, %v1372_v16  ;;  %vm767_vm13 = vcmp.eq.s32.totalorder %v3696_v56, %v2797_v45  ;;  %vm768_vm1 = vcmp.eq.s32.totalorder %v3696_v56, %v2808_v52 }
 0x16e   : > { %v1429_v23 = vpop.permute.xlu1 %1428  ;;  %v1955_v20 = vsel %vm239_vm15, 1.0, %v2459_v1  ;;  %v1956_v33 = vsel %vm240_vm0, 1.0, %v2459_v1  ;;  %v2019_v41 = vsel %vm591_vm8, 1.0, %v2459_v1  ;;  %v2020_v56 = vsel %vm592_vm9, 1.0, %v2459_v1 }
 0x16f   : > { %vm1465_vm4 = vcmp.eq.s32.totalorder %v1429_v23, %v2797_v45  ;;  %vm1466_vm5 = vcmp.eq.s32.totalorder %v1429_v23, %v2808_v52  ;;  %v1576_v50 = vpack.c.bf16 %v1548_v62, %v3642_v2  ;;  %v1575_v27 = vpack.c.bf16 %v1547_v25, %v3631_v44 }
 0x170   : > { %v2173_v51 = vsel %vm1465_vm4, 1.0, %v2459_v1  ;;  %v2174_v35 = vsel %vm1466_vm5, 1.0, %v2459_v1  ;;  %v2034_v2 = vsel %vm750_vm3, 1.0, %v2459_v1  ;;  %v511_v7 = vadd.f32 %v1987_v39, %v1955_v20 }
 0x171   : > { %v1561_v22 = vadd.f32 %v2173_v51, %v1385_v5  ;;  %v1562_v44 = vadd.f32 %v2174_v35, %v1386_v63  ;;  %1757 = vmatprep.mubr.bf16.mxu0 %v1576_v50  ;;  %v846_v42 = vadd.f32 %v2034_v2, %v670_v29  ;;  %v512_v36 = vadd.f32 %v1988_v37, %v1956_v33  ;;  %v4125_v33 = vld [vmem:[#allocation9_spill] sm:$0xff] }
 0x172   : > { %1758 = vmatmul.mubr.bf16.gmra.mxu0 %v1575_v27  ;;  %v2051_v12 = vsel %vm767_vm13, 1.0, %v2459_v1  ;;  %v2052_v38 = vsel %vm768_vm1, 1.0, %v2459_v1  ;;  %v687_v58 = vadd.f32 %v2019_v41, %v511_v7  ;;  %vm1119_vm12 = vcmp.eq.s32.totalorder %v3501_v30, %v2797_v45  ;;  %v4122_v27 = vld [vmem:[#allocation18_spill] sm:$0xff]  ;;  %v4127_v7 = vld [vmem:[#allocation11_spill] sm:$0xff] }
 0x173   : > { %v883_v0 = vpop.permute.xlu1 %882  ;;  %v1584_v60 = vpack.c.bf16 %v3668_v4, %v1562_v44  ;;  %v1583_v54 = vpack.c.bf16 %v3666_v28, %v1561_v22  ;;  %v688_v16 = vadd.f32 %v2020_v56, %v512_v36  ;;  %vm1120_vm14 = vcmp.eq.s32.totalorder %v3501_v30, %v2808_v52  ;;  %v4126_v41 = vld [vmem:[#allocation10_spill] sm:$0xff] }
 0x174   : > { %vm925_vm10 = vcmp.eq.s32.totalorder %v883_v0, %v2797_v45  ;;  %vm926_vm11 = vcmp.eq.s32.totalorder %v883_v0, %v2808_v52  ;;  %v863_v59 = vadd.f32 %v2051_v12, %v687_v58  ;;  %v2115_v9 = vsel %vm1119_vm12, 1.0, %v2459_v1 }
 0x175   : > { %v2065_v49 = vsel %vm925_vm10, 1.0, %v2459_v1  ;;  %v2066_v15 = vsel %vm926_vm11, 1.0, %v2459_v1  ;;  %1789 = vmatprep.mubr.bf16.mxu1 %v1584_v60  ;;  %v864_v3 = vadd.f32 %v2052_v38, %v688_v16  ;;  %v2116_v21 = vsel %vm1120_vm14, 1.0, %v2459_v1 }
 0x176   : > { %v1021_v28 = vadd.f32 %v2065_v49, %v845_v14  ;;  %v1022_v4 = vadd.f32 %v2066_v15, %v846_v42  ;;  %1790 = vmatmul.mubr.bf16.gmra.mxu1 %v1583_v54  ;;  %vm1279_vm2 = vcmp.eq.s32.totalorder %v1238_v13, %v2797_v45  ;;  %vm1280_vm3 = vcmp.eq.s32.totalorder %v1238_v13, %v2808_v52 }
 0x177   : > { %v3796_v8 = vpop.permute.xlu1 %906  ;;  %v2131_v23 = vsel %vm1279_vm2, 1.0, %v2459_v1  ;;  %v2132_v50 = vsel %vm1280_vm3, 1.0, %v2459_v1  ;;  %vm1455_vm6 = vcmp.eq.s32.totalorder %v4122_v27, %v2797_v45  ;;  %vm1456_vm7 = vcmp.eq.s32.totalorder %v4122_v27, %v2808_v52 }
 0x178   : > { %v3798_v46 = vadd.f32 %v2097_v11, %v1021_v28  ;;  %v3800_v17 = vadd.f32 %v2098_v19, %v1022_v4  ;;  %v2163_v2 = vsel %vm1455_vm6, 1.0, %v2459_v1  ;;  %v2164_v22 = vsel %vm1456_vm7, 1.0, %v2459_v1 }
 0x179   : > { %vm765_vm13 = vcmp.eq.s32.totalorder %v3670_v43, %v2797_v45  ;;  %vm766_vm1 = vcmp.eq.s32.totalorder %v3670_v43, %v2808_v52  ;;  %vm579_vm2 = vcmp.eq.s32.totalorder %v4125_v33, %v2797_v45  ;;  %vm580_vm3 = vcmp.eq.s32.totalorder %v4125_v33, %v2808_v52 }
 0x17a   : > { %v2049_v49 = vsel %vm765_vm13, 1.0, %v2459_v1  ;;  %v2050_v15 = vsel %vm766_vm1, 1.0, %v2459_v1  ;;  %v2007_v27 = vsel %vm579_vm2, 1.0, %v2459_v1  ;;  %vm1107_vm2 = vcmp.eq.s32.totalorder %v3532_v48, %v2797_v45 }
 0x17b   : > { %v910_v34 = vpop.permute.xlu1 %909  ;;  %v861_v56 = vadd.f32 %v2049_v49, %v4126_v41  ;;  %v862_v36 = vadd.f32 %v2050_v15, %v4127_v7  ;;  %v2103_v33 = vsel %vm1107_vm2, 1.0, %v2459_v1 }
 0x17c   : > { %vm943_vm15 = vcmp.eq.s32.totalorder %v910_v34, %v2797_v45  ;;  %vm944_vm0 = vcmp.eq.s32.totalorder %v910_v34, %v2808_v52 }
 0x17d   : > { %v2083_v6 = vsel %vm943_vm15, 1.0, %v2459_v1  ;;  %v2084_v32 = vsel %vm944_vm0, 1.0, %v2459_v1  ;;  %vm941_vm15 = vcmp.eq.s32.totalorder %v3796_v8, %v2797_v45  ;;  %vm942_vm0 = vcmp.eq.s32.totalorder %v3796_v8, %v2808_v52 }
 0x17e   : > { %v1039_v57 = vadd.f32 %v2083_v6, %v863_v59  ;;  %v1040_v24 = vadd.f32 %v2084_v32, %v864_v3  ;;  %v2081_v8 = vsel %vm941_vm15, 1.0, %v2459_v1  ;;  %v2082_v12 = vsel %vm942_vm0, 1.0, %v2459_v1 }
 0x180   : > { %v1062_v30 = vpop.permute.xlu1 %1061  ;;  %v3816_v25 = vadd.f32 %v2115_v9, %v1039_v57  ;;  %v3818_v62 = vadd.f32 %v2116_v21, %v1040_v24  ;;  %v1037_v9 = vadd.f32 %v2081_v8, %v861_v56  ;;  %v1038_v21 = vadd.f32 %v2082_v12, %v862_v36  ;;  %v1241_v8 = vpop.permute.xlu0 %1240 }
 0x181   : > { %vm1103_vm4 = vcmp.eq.s32.totalorder %v1062_v30, %v2797_v45  ;;  %vm1104_vm5 = vcmp.eq.s32.totalorder %v1062_v30, %v2808_v52 }
 0x182   : > { %v2099_v5 = vsel %vm1103_vm4, 1.0, %v2459_v1  ;;  %v2100_v63 = vsel %vm1104_vm5, 1.0, %v2459_v1 }
 0x183   : > { %v1199_v39 = vadd.f32 %v2099_v5, %v3261_v10  ;;  %v1200_v37 = vadd.f32 %v2100_v63, %v3264_v31  ;;  %v4123_v10 = vld [vmem:[#allocation7_spill] sm:$0xff]  ;;  %v4124_v31 = vld [vmem:[#allocation5_spill] sm:$0xff] }
 0x184   : > { %v1083_v51 = vpop.permute.xlu1 %1082  ;;  %vm403_vm8 = vcmp.eq.s32.totalorder %v4123_v10, %v2797_v45  ;;  %vm404_vm9 = vcmp.eq.s32.totalorder %v4123_v10, %v2808_v52  ;;  %vm227_vm10 = vcmp.eq.s32.totalorder %v4124_v31, %v2797_v45  ;;  %vm228_vm11 = vcmp.eq.s32.totalorder %v4124_v31, %v2808_v52 }
 0x185   : > { %v1375_v35 = vadd.f32 %v2131_v23, %v1199_v39  ;;  %v1376_v61 = vadd.f32 %v2132_v50, %v1200_v37  ;;  %v1975_v54 = vsel %vm403_vm8, 1.0, %v2459_v1  ;;  %v1976_v14 = vsel %vm404_vm9, 1.0, %v2459_v1 }
 0x186   : > { %v1943_v11 = vsel %vm227_vm10, 1.0, %v2459_v1  ;;  %v1944_v19 = vsel %vm228_vm11, 1.0, %v2459_v1  ;;  %vm1117_vm4 = vcmp.eq.s32.totalorder %v1083_v51, %v2797_v45  ;;  %vm1118_vm5 = vcmp.eq.s32.totalorder %v1083_v51, %v2808_v52 }
 0x187   : > { %v3834_v44 = vadd.f32 %v2163_v2, %v1375_v35  ;;  %v3836_v26 = vadd.f32 %v2164_v22, %v1376_v61  ;;  %v499_v4 = vadd.f32 %v1975_v54, %v1943_v11  ;;  %v500_v20 = vadd.f32 %v1976_v14, %v1944_v19 }
 0x188   : > { %v2113_v34 = vsel %vm1117_vm4, 1.0, %v2459_v1  ;;  %v2114_v59 = vsel %vm1118_vm5, 1.0, %v2459_v1  ;;  %v2008_v39 = vsel %vm580_vm3, 1.0, %v2459_v1  ;;  %vm1108_vm3 = vcmp.eq.s32.totalorder %v3532_v48, %v2808_v52 }
 0x189   : > { %v1235_v29 = vpop.permute.xlu1 %1234  ;;  %v1213_v5 = vadd.f32 %v2113_v34, %v1037_v9  ;;  %v1214_v63 = vadd.f32 %v2114_v59, %v1038_v21  ;;  %v675_v14 = vadd.f32 %v2007_v27, %v499_v4  ;;  %v2104_v48 = vsel %vm1108_vm3, 1.0, %v2459_v1 }
 0x18a   : > { %vm1277_vm12 = vcmp.eq.s32.totalorder %v1235_v29, %v2797_v45  ;;  %vm1278_vm14 = vcmp.eq.s32.totalorder %v1235_v29, %v2808_v52 }
 0x18b   : > { %v2129_v43 = vsel %vm1277_vm12, 1.0, %v2459_v1  ;;  %v2130_v28 = vsel %vm1278_vm14, 1.0, %v2459_v1 }
 0x18c   : > { %v1373_v38 = vadd.f32 %v2129_v43, %v3798_v46  ;;  %v1374_v58 = vadd.f32 %v2130_v28, %v3800_v17 }
 0x18d   : > { %v1259_v18 = vpop.permute.xlu1 %1258 }
 0x18e   : > { %vm1293_vm6 = vcmp.eq.s32.totalorder %v1259_v18, %v2797_v45  ;;  %vm1294_vm7 = vcmp.eq.s32.totalorder %v1259_v18, %v2808_v52 }
 0x18f   : > { %v2145_v6 = vsel %vm1293_vm6, 1.0, %v2459_v1  ;;  %v2146_v32 = vsel %vm1294_vm7, 1.0, %v2459_v1 }
 0x190   : > { %v1389_v37 = vadd.f32 %v2145_v6, %v1213_v5  ;;  %v1390_v51 = vadd.f32 %v2146_v32, %v1214_v63  ;;  %v4128_v5 = vld [vmem:[#allocation12_spill] sm:$0xff] }
 0x191   : > { %v1262_v0 = vpop.permute.xlu1 %1261 }
 0x192   : > { %vm1295_vm10 = vcmp.eq.s32.totalorder %v1262_v0, %v2797_v45  ;;  %vm1296_vm11 = vcmp.eq.s32.totalorder %v1262_v0, %v2808_v52 }
 0x193   : > { %v2147_v23 = vsel %vm1295_vm10, 1.0, %v2459_v1  ;;  %v2148_v50 = vsel %vm1296_vm11, 1.0, %v2459_v1  ;;  %vm1281_vm10 = vcmp.eq.s32.totalorder %v1241_v8, %v2797_v45  ;;  %vm1282_vm11 = vcmp.eq.s32.totalorder %v1241_v8, %v2808_v52 }
 0x194   : > { %v1391_v22 = vadd.f32 %v2147_v23, %v3816_v25  ;;  %v676_v25 = vadd.f32 %v2008_v39, %v500_v20  ;;  %v4129_v23 = vld [vmem:[#allocation13_spill] sm:$0xff] }
 0x196   : > { %v3838_v60 = vpop.permute.xlu1 %715 }
 0x197   : > { %vm755_vm12 = vcmp.eq.s32.totalorder %v3838_v60, %v2797_v45  ;;  %vm756_vm14 = vcmp.eq.s32.totalorder %v3838_v60, %v2808_v52 }
 0x198   : > { %v2040_v29 = vsel %vm756_vm14, 1.0, %v2459_v1 }
 0x199   : > { %v852_v15 = vadd.f32 %v2040_v29, %v676_v25 }
 0x19a   : > { %v3856_v42 = vpop.permute.xlu1 %736 }
 0x19f   : > { %v1411_v16 = vpop.permute.xlu1 %1410 }
 0x1a0   : > { %vm1453_vm8 = vcmp.eq.s32.totalorder %v1411_v16, %v2797_v45  ;;  %vm1454_vm9 = vcmp.eq.s32.totalorder %v1411_v16, %v2808_v52 }
 0x1a1   : > { %v2161_v3 = vsel %vm1453_vm8, 1.0, %v2459_v1  ;;  %v2162_v13 = vsel %vm1454_vm9, 1.0, %v2459_v1  ;;  %vm769_vm8 = vcmp.eq.s32.totalorder %v3856_v42, %v2797_v45  ;;  %vm770_vm9 = vcmp.eq.s32.totalorder %v3856_v42, %v2808_v52 }
 0x1a2   : > { %v1549_v46 = vadd.f32 %v2161_v3, %v1373_v38  ;;  %v1550_v17 = vadd.f32 %v2162_v13, %v1374_v58  ;;  %v3930_v58 = vpop.permute.xlu0 %1267  ;;  %v2053_v42 = vsel %vm769_vm8, 1.0, %v2459_v1  ;;  %v2054_v13 = vsel %vm770_vm9, 1.0, %v2459_v1 }
 0x1a3   : > { %v1435_v57 = vpop.permute.xlu1 %1434  ;;  %v865_v63 = vadd.f32 %v2053_v42, %v4128_v5  ;;  %vm1299_vm2 = vcmp.eq.s32.totalorder %v3930_v58, %v2797_v45  ;;  %vm1300_vm3 = vcmp.eq.s32.totalorder %v3930_v58, %v2808_v52 }
 0x1a4   : > { %vm1469_vm13 = vcmp.eq.s32.totalorder %v1435_v57, %v2797_v45  ;;  %vm1470_vm1 = vcmp.eq.s32.totalorder %v1435_v57, %v2808_v52  ;;  %v1578_v24 = vpack.c.bf16 %v3836_v26, %v1550_v17  ;;  %v1577_v30 = vpack.c.bf16 %v3834_v44, %v1549_v46 }
 0x1a5   : > { %v2177_v35 = vsel %vm1469_vm13, 1.0, %v2459_v1  ;;  %v2178_v61 = vsel %vm1470_vm1, 1.0, %v2459_v1  ;;  %v1392_v44 = vadd.f32 %v2148_v50, %v3818_v62  ;;  %v2039_v26 = vsel %vm755_vm12, 1.0, %v2459_v1 }
 0x1a6   : > { %1765 = vmatprep.mubr.bf16.mxu0 %v1578_v24  ;;  %v1565_v60 = vadd.f32 %v2177_v35, %v1389_v37  ;;  %v1566_v10 = vadd.f32 %v2178_v61, %v1390_v51  ;;  %v851_v49 = vadd.f32 %v2039_v26, %v675_v14  ;;  %v1420_v34 = vpop.permute.xlu0 %1419  ;;  %v2133_v46 = vsel %vm1281_vm10, 1.0, %v2459_v1 }
 0x1a7   : > { %v1438_v2 = vpop.permute.xlu1 %1437  ;;  %1766 = vmatmul.mubr.bf16.gmra.mxu0 %v1577_v30  ;;  %v2134_v17 = vsel %vm1282_vm11, 1.0, %v2459_v1  ;;  %v866_v50 = vadd.f32 %v2054_v13, %v4129_v23 }
 0x1a8   : > { %vm1471_vm15 = vcmp.eq.s32.totalorder %v1438_v2, %v2797_v45  ;;  %vm1472_vm0 = vcmp.eq.s32.totalorder %v1438_v2, %v2808_v52 }
 0x1a9   : > { %v2179_v18 = vsel %vm1471_vm15, 1.0, %v2459_v1  ;;  %v2180_v0 = vsel %vm1472_vm0, 1.0, %v2459_v1  ;;  %vm1459_vm15 = vcmp.eq.s32.totalorder %v1420_v34, %v2797_v45  ;;  %vm1460_vm0 = vcmp.eq.s32.totalorder %v1420_v34, %v2808_v52 }
 0x1aa   : > { %v1567_v31 = vadd.f32 %v2179_v18, %v1391_v22  ;;  %v1568_v54 = vadd.f32 %v2180_v0, %v1392_v44  ;;  %v2168_v51 = vsel %vm1460_vm0, 1.0, %v2459_v1 }
 0x1ac   : > { %v892_v62 = vpop.permute.xlu1 %891  ;;  %v1586_v11 = vpack.c.bf16 %v1568_v54, %v1566_v10  ;;  %v1585_v19 = vpack.c.bf16 %v1567_v31, %v1565_v60 }
 0x1ad   : > { %vm931_vm4 = vcmp.eq.s32.totalorder %v892_v62, %v2797_v45  ;;  %vm932_vm5 = vcmp.eq.s32.totalorder %v892_v62, %v2808_v52 }
 0x1ae   : > { %v2071_v43 = vsel %vm931_vm4, 1.0, %v2459_v1  ;;  %v2072_v28 = vsel %vm932_vm5, 1.0, %v2459_v1  ;;  %1797 = vmatprep.mubr.bf16.mxu1 %v1586_v11 }
 0x1af   : > { %v1027_v4 = vadd.f32 %v2071_v43, %v851_v49  ;;  %v1028_v20 = vadd.f32 %v2072_v28, %v852_v15  ;;  %1798 = vmatmul.mubr.bf16.gmra.mxu1 %v1585_v19 }
 0x1b0   : > { %v913_v41 = vpop.permute.xlu1 %912 }
 0x1b1   : > { %v1203_v56 = vadd.f32 %v2103_v33, %v1027_v4  ;;  %v1204_v7 = vadd.f32 %v2104_v48, %v1028_v20  ;;  %vm945_vm12 = vcmp.eq.s32.totalorder %v913_v41, %v2797_v45  ;;  %vm946_vm14 = vcmp.eq.s32.totalorder %v913_v41, %v2808_v52 }
 0x1b2   : > { %v2085_v32 = vsel %vm945_vm12, 1.0, %v2459_v1  ;;  %v2086_v57 = vsel %vm946_vm14, 1.0, %v2459_v1 }
 0x1b3   : > { %v1041_v37 = vadd.f32 %v2085_v32, %v865_v63 }
 0x1b5   : > { %v1065_v36 = vpop.permute.xlu1 %1064 }
 0x1b6   : > { %vm1105_vm6 = vcmp.eq.s32.totalorder %v1065_v36, %v2797_v45  ;;  %vm1106_vm7 = vcmp.eq.s32.totalorder %v1065_v36, %v2808_v52 }
 0x1b7   : > { %v2101_v59 = vsel %vm1105_vm6, 1.0, %v2459_v1  ;;  %v2102_v3 = vsel %vm1106_vm7, 1.0, %v2459_v1 }
 0x1b8   : > { %v1201_v24 = vadd.f32 %v2101_v59, %v3296_v47  ;;  %v1202_v30 = vadd.f32 %v2102_v3, %v3299_v40  ;;  %v1042_v47 = vadd.f32 %v2086_v57, %v866_v50  ;;  %v2167_v40 = vsel %vm1459_vm15, 1.0, %v2459_v1 }
 0x1b9   : > { %v1089_v12 = vpop.permute.xlu1 %1088 }
 0x1ba   : > { %v1377_v35 = vadd.f32 %v2133_v46, %v1201_v24  ;;  %v1378_v61 = vadd.f32 %v2134_v17, %v1202_v30  ;;  %vm1121_vm6 = vcmp.eq.s32.totalorder %v1089_v12, %v2797_v45  ;;  %vm1122_vm7 = vcmp.eq.s32.totalorder %v1089_v12, %v2808_v52 }
 0x1bb   : > { %v2117_v31 = vsel %vm1121_vm6, 1.0, %v2459_v1  ;;  %v2118_v54 = vsel %vm1122_vm7, 1.0, %v2459_v1 }
 0x1bc   : > { %v1217_v43 = vadd.f32 %v2117_v31, %v1041_v37  ;;  %v1218_v28 = vadd.f32 %v2118_v54, %v1042_v47 }
 0x1bd   : > { %v1092_v38 = vpop.permute.xlu1 %1091 }
 0x1be   : > { %vm1123_vm4 = vcmp.eq.s32.totalorder %v1092_v38, %v2797_v45  ;;  %vm1124_vm5 = vcmp.eq.s32.totalorder %v1092_v38, %v2808_v52 }
 0x1bf   : > { %v2119_v22 = vsel %vm1123_vm4, 1.0, %v2459_v1  ;;  %v2120_v44 = vsel %vm1124_vm5, 1.0, %v2459_v1 }
 0x1c0   : > { %v1219_v14 = vadd.f32 %v2119_v22, %v3334_v55  ;;  %v1220_v25 = vadd.f32 %v2120_v44, %v3337_v53  ;;  %v2151_v55 = vsel %vm1299_vm2, 1.0, %v2459_v1  ;;  %v2152_v53 = vsel %vm1300_vm3, 1.0, %v2459_v1 }
 0x1c2   : > { %v1244_v16 = vpop.permute.xlu1 %1243  ;;  %v1395_v48 = vadd.f32 %v2151_v55, %v1219_v14  ;;  %v1396_v41 = vadd.f32 %v2152_v53, %v1220_v25 }
 0x1c3   : > { %vm1283_vm13 = vcmp.eq.s32.totalorder %v1244_v16, %v2797_v45  ;;  %vm1284_vm1 = vcmp.eq.s32.totalorder %v1244_v16, %v2808_v52 }
 0x1c4   : > { %v2135_v9 = vsel %vm1283_vm13, 1.0, %v2459_v1  ;;  %v2136_v21 = vsel %vm1284_vm1, 1.0, %v2459_v1 }
 0x1c5   : > { %v1379_v27 = vadd.f32 %v2135_v9, %v1203_v56  ;;  %v1380_v39 = vadd.f32 %v2136_v21, %v1204_v7 }
 0x1c6   : > { %v1265_v6 = vpop.permute.xlu1 %1264 }
 0x1c7   : > { %v1555_v26 = vadd.f32 %v2167_v40, %v1379_v27  ;;  %v1556_v29 = vadd.f32 %v2168_v51, %v1380_v39  ;;  %vm1297_vm10 = vcmp.eq.s32.totalorder %v1265_v6, %v2797_v45  ;;  %vm1298_vm11 = vcmp.eq.s32.totalorder %v1265_v6, %v2808_v52 }
 0x1c8   : > { %v2149_v49 = vsel %vm1297_vm10, 1.0, %v2459_v1  ;;  %v2150_v15 = vsel %vm1298_vm11, 1.0, %v2459_v1 }
 0x1c9   : > { %v1393_v56 = vadd.f32 %v2149_v49, %v1217_v43  ;;  %v1394_v7 = vadd.f32 %v2150_v15, %v1218_v28 }
 0x1cb   : > { %v1417_v2 = vpop.permute.xlu1 %1416 }
 0x1cc   : > { %vm1457_vm8 = vcmp.eq.s32.totalorder %v1417_v2, %v2797_v45  ;;  %vm1458_vm9 = vcmp.eq.s32.totalorder %v1417_v2, %v2808_v52 }
 0x1cd   : > { %v2165_v18 = vsel %vm1457_vm8, 1.0, %v2459_v1  ;;  %v2166_v0 = vsel %vm1458_vm9, 1.0, %v2459_v1 }
 0x1ce   : > { %v1553_v60 = vadd.f32 %v2165_v18, %v1377_v35  ;;  %v1554_v10 = vadd.f32 %v2166_v0, %v1378_v61 }
 0x1cf   : > { %v1441_v62 = vpop.permute.xlu1 %1440 }
 0x1d0   : > { %vm1473_vm13 = vcmp.eq.s32.totalorder %v1441_v62, %v2797_v45  ;;  %vm1474_vm1 = vcmp.eq.s32.totalorder %v1441_v62, %v2808_v52  ;;  %v1580_v11 = vpack.c.bf16 %v1556_v29, %v1554_v10  ;;  %v1579_v19 = vpack.c.bf16 %v1555_v26, %v1553_v60 }
 0x1d1   : > { %v2181_v4 = vsel %vm1473_vm13, 1.0, %v2459_v1  ;;  %v2182_v20 = vsel %vm1474_vm1, 1.0, %v2459_v1 }
 0x1d2   : > { %1773 = vmatprep.mubr.bf16.mxu0 %v1580_v11  ;;  %v1569_v12 = vadd.f32 %v2181_v4, %v1393_v56  ;;  %v1570_v38 = vadd.f32 %v2182_v20, %v1394_v7 }
 0x1d3   : > { %v1444_v33 = vpop.permute.xlu1 %1443  ;;  %1774 = vmatmul.mubr.bf16.gmra.mxu0 %v1579_v19 }
 0x1d4   : > { %vm1475_vm12 = vcmp.eq.s32.totalorder %v1444_v33, %v2797_v45  ;;  %vm1476_vm14 = vcmp.eq.s32.totalorder %v1444_v33, %v2808_v52 }
 0x1d5   : > { %v2183_v36 = vsel %vm1475_vm12, 1.0, %v2459_v1  ;;  %v2184_v8 = vsel %vm1476_vm14, 1.0, %v2459_v1 }
 0x1d6   : > { %v1571_v58 = vadd.f32 %v2183_v36, %v1395_v48  ;;  %v1572_v16 = vadd.f32 %v2184_v8, %v1396_v41 }
 0x1d8   : > { %v1588_v34 = vpack.c.bf16 %v1572_v16, %v1570_v38  ;;  %v1587_v59 = vpack.c.bf16 %v1571_v58, %v1569_v12 }
 0x1da   : > { %1805 = vmatprep.mubr.bf16.mxu1 %v1588_v34 }
 0x1db   : > { %1806 = vmatmul.mubr.bf16.gmra.mxu1 %v1587_v59 }
 0x20c   : > { %v2247_v3 = vpop.f32.mrf.mxu1 }
 0x20e   : > { %v2248_v42 = vpop.f32.mrf.mxu1 }
 0x20f   : > { %v2249_v45 = vadd.f32 %v2248_v42, %v2247_v3 }
 0x210   : > { %v2250_v13 = vpop.f32.mrf.mxu1 }
 0x211   : > { %v1822_v52 = vmul.f32 0.125, %v2249_v45 }
 0x212   : > { %v2251_v46 = vpop.f32.mrf.mxu1 }
 0x213   : > { %1838 = vst [vmem:[%s4007_s22 + $0x40] sm:$0xff] %v1822_v52  ;;  %v2252_v1 = vadd.f32 %v2251_v46, %v2250_v13 }
 0x215   : > { %v1823_v17 = vmul.f32 0.125, %v2252_v1 }
 0x217   : > { %1839 = vst [vmem:[%s4007_s22 + $0x48] sm:$0xff] %v1823_v17 }
 0x21e   : > { %v2223_v9 = vpop.f32.mrf.mxu0 }
 0x220   : > { %v2224_v21 = vpop.f32.mrf.mxu0 }
 0x221   : > { %v2225_v6 = vadd.f32 %v2224_v21, %v2223_v9 }
 0x222   : > { %v2226_v32 = vpop.f32.mrf.mxu0 }
 0x223   : > { %v1814_v57 = vmul.f32 0.125, %v2225_v6 }
 0x224   : > { %v2227_v24 = vpop.f32.mrf.mxu0 }
 0x225   : > { %1830 = vst [vmem:[%s4007_s22] sm:$0xff] %v1814_v57  ;;  %v2228_v30 = vadd.f32 %v2227_v24, %v2226_v32 }
 0x227   : > { %v1815_v5 = vmul.f32 0.125, %v2228_v30 }
 0x229   : > { %1831 = vst [vmem:[%s4007_s22 + $0x8] sm:$0xff] %v1815_v5 }
 0x232   : > { %v2229_v63 = vpop.f32.mrf.mxu0 }
 0x234   : > { %v2230_v23 = vpop.f32.mrf.mxu0 }
 0x235   : > { %v2231_v50 = vadd.f32 %v2230_v23, %v2229_v63 }
 0x236   : > { %v2232_v27 = vpop.f32.mrf.mxu0  ;;  %v2253_v39 = vpop.f32.mrf.mxu1 }
 0x237   : > { %v1816_v37 = vmul.f32 0.125, %v2231_v50 }
 0x238   : > { %v2233_v47 = vpop.f32.mrf.mxu0  ;;  %v2254_v40 = vpop.f32.mrf.mxu1 }
 0x239   : > { %1832 = vst [vmem:[%s4007_s22 + $0x10] sm:$0xff] %v1816_v37  ;;  %v2234_v51 = vadd.f32 %v2233_v47, %v2232_v27  ;;  %v2255_v35 = vadd.f32 %v2254_v40, %v2253_v39 }
 0x23a   : > { %v2256_v61 = vpop.f32.mrf.mxu1 }
 0x23b   : > { %v1817_v2 = vmul.f32 0.125, %v2234_v51  ;;  %v1824_v22 = vmul.f32 0.125, %v2255_v35 }
 0x23c   : > { %v2257_v44 = vpop.f32.mrf.mxu1 }
 0x23d   : > { %1833 = vst [vmem:[%s4007_s22 + $0x18] sm:$0xff] %v1817_v2  ;;  %1840 = vst [vmem:[%s4007_s22 + $0x50] sm:$0xff] %v1824_v22  ;;  %v2258_v26 = vadd.f32 %v2257_v44, %v2256_v61 }
 0x23f   : > { %v1825_v29 = vmul.f32 0.125, %v2258_v26 }
 0x241   : > { %1841 = vst [vmem:[%s4007_s22 + $0x58] sm:$0xff] %v1825_v29 }
 0x267   : > { %v2235_v18 = vpop.f32.mrf.mxu0 }
 0x269   : > { %v2236_v0 = vpop.f32.mrf.mxu0 }
 0x26a   : > { %v2237_v60 = vadd.f32 %v2236_v0, %v2235_v18 }
 0x26b   : > { %v2238_v10 = vpop.f32.mrf.mxu0 }
 0x26c   : > { %v1818_v31 = vmul.f32 0.125, %v2237_v60 }
 0x26d   : > { %v2239_v54 = vpop.f32.mrf.mxu0 }
 0x26e   : > { %1834 = vst [vmem:[%s4007_s22 + $0x20] sm:$0xff] %v1818_v31  ;;  %v2240_v14 = vadd.f32 %v2239_v54, %v2238_v10 }
 0x26f   : > { %v2259_v25 = vpop.f32.mrf.mxu1 }
 0x270   : > { %v1819_v62 = vmul.f32 0.125, %v2240_v14 }
 0x271   : > { %v2260_v11 = vpop.f32.mrf.mxu1 }
 0x272   : > { %1835 = vst [vmem:[%s4007_s22 + $0x28] sm:$0xff] %v1819_v62  ;;  %v2261_v19 = vadd.f32 %v2260_v11, %v2259_v25 }
 0x273   : > { %v2262_v49 = vpop.f32.mrf.mxu1 }
 0x274   : > { %v1826_v15 = vmul.f32 0.125, %v2261_v19 }
 0x275   : > { %v2263_v43 = vpop.f32.mrf.mxu1 }
 0x276   : > { %1842 = vst [vmem:[%s4007_s22 + $0x60] sm:$0xff] %v1826_v15  ;;  %v2264_v28 = vadd.f32 %v2263_v43, %v2262_v49 }
 0x278   : > { %v1827_v55 = vmul.f32 0.125, %v2264_v28 }
 0x27a   : > { %1843 = vst [vmem:[%s4007_s22 + $0x68] sm:$0xff] %v1827_v55 }
 0x293   : > { %v2241_v53 = vpop.f32.mrf.mxu0 }
 0x295   : > { %v2242_v4 = vpop.f32.mrf.mxu0 }
 0x296   : > { %v2243_v20 = vadd.f32 %v2242_v4, %v2241_v53 }
 0x297   : > { %v2244_v33 = vpop.f32.mrf.mxu0 }
 0x298   : > { %v1820_v48 = vmul.f32 0.125, %v2243_v20 }
 0x299   : > { %v2245_v41 = vpop.f32.mrf.mxu0 }
 0x29a   : > { %1836 = vst [vmem:[%s4007_s22 + $0x30] sm:$0xff] %v1820_v48  ;;  %v2246_v56 = vadd.f32 %v2245_v41, %v2244_v33 }
 0x29b   : > { %v2265_v7 = vpop.f32.mrf.mxu1 }
 0x29c   : > { %v1821_v36 = vmul.f32 0.125, %v2246_v56 }
 0x29d   : > { %v2266_v8 = vpop.f32.mrf.mxu1 }
 0x29e   : > { %1837 = vst [vmem:[%s4007_s22 + $0x38] sm:$0xff] %v1821_v36  ;;  %v2267_v12 = vadd.f32 %v2266_v8, %v2265_v7 }
 0x29f   : > { %v2268_v38 = vpop.f32.mrf.mxu1 }
 0x2a0   : > { %v1828_v58 = vmul.f32 0.125, %v2267_v12 }
 0x2a1   : > { %v2269_v16 = vpop.f32.mrf.mxu1 }
 0x2a2   : > { %1844 = vst [vmem:[%s4007_s22 + $0x70] sm:$0xff] %v1828_v58  ;;  %v2270_v34 = vadd.f32 %v2269_v16, %v2268_v38 }
 0x2a4   : > { %v1829_v59 = vmul.f32 0.125, %v2270_v34 }
 0x2a6   : > { %1845 = vst [vmem:[%s4007_s22 + $0x78] sm:$0xff] %v1829_v59 }
 0x2a7   : > { %2402 = shalt.err (!%p2399_p3)
}
 0x2a8   : > { %s2403_s5 = scalar_lea.hbm %s4029_s28, 2048  ;;  %s2407_s8 = scalar_lea.hbm %s4078_s2, 4096 }
 0x2a9   : > { %p2404_p4 = scmp.ne.s32.totalorder %s4029_s28, %s2403_s5  ;;  %p2408_p9 = scmp.lt.s32.totalorder %s4029_s28, %s4078_s2 }
 0x2aa   : > { %p2409_p10 = scmp.lt.s32.totalorder %s2407_s8, %s2403_s5 }
 0x2ab   : > { %p2405_p7 = pnand %p2404_p4, %p2516_p5 }
 0x2ac   : > { %p2410_p11 = por %p2409_p10, %p2408_p9 }
 0x2ad   : > { %p2406_p8 = pneg %p2405_p7 }
 0x2af   : > { %p2411_p12 = pnand %p2410_p11, %p2406_p8 }
 0x2b1   : > { %2414 = shalt.err (!%p2411_p12)
}
 0x2b2   : > { %s2461_s17 = smov 128   ;;  %s2462_s25 = smov 8  }
 0x2b3   : > { %2287 = dma.vmem_to_hbm [thread:$0]  (%p2516_p5), %s4031_s24, 2048, %s4029_s28, %s4036_s29, %s2461_s17, %s2461_s17, %s2462_s25  }
 0x2b4 PF: > { %p2293_p13 = scmp.ge.s32.totalorder %s2449_s12, 2  ;;  %s1875_s21 = sand.u32 1, %s2437_s9  }
 0x2b5   : > { %s1876_s22 = scalar_lea.sflag [#allocation3], %s1875_s21 }
 0x2b6   : > { %p2290_p0 = pnand %p2293_p13, %p2520_p6 }
 0x2b8   : > { %p2291_p1 = pneg %p2290_p0 }
 0x2ba   : > { %2432 = dma.done.wait (%p2291_p1), %s1876_s22, 2048  }
 0x2bb   : > { %2434 = vsyncadd (%p2291_p1), %s1876_s22, 4294965248  ;;  %p12_p2 = scmp.ge.s32.totalorder %s2503_s15, 4   ;;  %s4130_s9 = smov %s2441_s10 }
 0x2bc   : > { %s4131_s10 = smov %s2445_s11  ;;  %s4132_s11 = smov %s2514_s18 }
 0x2bd   : > { %s4133_s12 = smov %s2503_s15  ;;  %14 = sbr.rel (!%p12_p2) target bundleno = 3 (0x3), region = 63 }
 0x2c2   :  { %1881 = vsyncpa [#allocation3], 1 }
 0x2c3   :  { %1883 = vsyncpa [#allocation3 + $0x1], 1 }

</bundles_post_ra>
